<compile_context>
chip_gen: v7x
topology: tpu7x:2x2x1
jax: 0.10.0
libtpu: 0.0.40
codegen_flags: <defaults>
</compile_context>

<pallas_src>
from functools import partial

import jax
import jax.numpy as jnp
from jax.experimental import pallas as pl
from jax.experimental.pallas import tpu as pltpu

LANE = 128  # TPU lane width; outputs / projection weights are padded to this.


def _contrastive_kernel(xp_ref, wtoe_ref, bc_ref, poolr_ref, poolc_ref,
                        w1_ref, b1_ref, w2_ref, b2_ref,
                        h_ref, z_ref, acc_ref):
    """One grid step == TB images: conv3x3 + ReLU + global-avg-pool + projection."""
    TB, Hp2, K = xp_ref.shape          # padded images: (TB, H+2, W*C)
    H = Hp2 - 2
    WF = wtoe_ref.shape[2]             # W * F (conv output with (x, f) flattened in lanes)

    # --- encoder: 3x3 conv as 3 accumulated MXU matmuls (one per kernel row kh) ---
    # LHS = rows [kh : kh+H] of every image, collapsed to (TB*H, W*C) so the MXU
    # sees M = 256; RHS = the Toeplitz-expanded weight slab for that kernel row
    # (horizontal SAME-padding is already folded into the slab). The f32
    # accumulator lives in VMEM scratch to keep register pressure low.
    for kh in range(3):                                        # static unroll
        lhs = xp_ref[:, kh:kh + H, :].reshape(TB * H, K)       # bf16, (TB*H, W*C)
        contrib = jnp.dot(lhs, wtoe_ref[kh],
                          preferred_element_type=jnp.float32)  # (TB*H, W*F) f32
        if kh == 0:
            acc_ref[...] = contrib
        else:
            acc_ref[...] += contrib

    feat = jnp.maximum(acc_ref[...] + bc_ref[...], 0.0)        # (TB*H, W*F) f32

    # --- encoder: global average pool, entirely on the MXU ---
    # Per-image row sums via a block-diagonal ones matrix (M = TB), then the
    # channel-pool matrix applies the 1/(H*W) mean and pads to 128 lanes.
    sums = jnp.dot(poolr_ref[...], feat,
                   preferred_element_type=jnp.float32)         # (TB, W*F)
    h_full = jnp.dot(sums, poolc_ref[...],
                     preferred_element_type=jnp.float32)       # (TB, 128)
    h_ref[...] = h_full                                        # full-vreg lane-dense store

    # --- projection head: Linear -> ReLU -> Linear (weights zero-padded to 128) ---
    z1 = jnp.maximum(jnp.dot(h_full, w1_ref[...],
                             preferred_element_type=jnp.float32) + b1_ref[...], 0.0)
    z_ref[...] = jnp.dot(z1, w2_ref[...],
                         preferred_element_type=jnp.float32) + b2_ref[...]


def prepare_params(params, H, W, TB):
    """One-time expansion of raw parameters into kernel-friendly layouts."""
    w_conv, bc, w1, b1, w2, b2 = params
    KH, KW, C, F = w_conv.shape
    assert (KH, KW) == (3, 3)
    P1, P2 = w1.shape[1], w2.shape[1]
    assert F <= LANE and P1 <= LANE and P2 <= LANE

    # Toeplitz-expanded conv weights with horizontal SAME-padding absorbed:
    #   wtoe[kh, xin*C + c, x*F + f] = w_conv[kh, kw, c, f]  where xin = x + kw - 1
    # (out-of-range xin entries simply don't exist -> zero padding in x).
    # TODO(synk): for large W this slab is O(W^2*C*F); switch to per-kw matmuls on a
    # lane-shifted LHS (pltpu.roll) to keep v7x's 64 MiB VMEM comfortable.
    slabs = []
    for kh in range(3):
        slab = jnp.zeros((W * C, W * F), jnp.float32)
        for kw in range(3):
            shift = jnp.eye(W, W, k=1 - kw, dtype=jnp.float32)   # [xin, x] = 1 iff xin = x+kw-1
            slab = slab + jnp.kron(shift, w_conv[kh, kw])
        slabs.append(slab)
    wtoe = jnp.stack(slabs).astype(jnp.bfloat16)                 # (3, W*C, W*F)

    # Conv bias tiled to the (x, f)-flattened lane layout: bc_tile[0, x*F+f] = bc[f].
    bc_tile = jnp.tile(bc.reshape(1, F), (1, W)).astype(jnp.float32)   # (1, W*F)

    # Pooling matrices:
    #   poolr[b, b'*H + y] = 1 if b == b'          (per-image row sum, M = TB)
    #   poolc[x*F + f, f]  = 1/(H*W)               (channel gather + mean, padded to 128)
    poolr = jnp.kron(jnp.eye(TB, dtype=jnp.float32),
                     jnp.ones((1, H), jnp.float32))              # (TB, TB*H)
    poolc = jnp.tile(jnp.eye(F, dtype=jnp.float32), (W, 1)) / float(H * W)
    poolc = jnp.pad(poolc, ((0, 0), (0, LANE - F)))              # (W*F, 128)

    # Projection weights/biases zero-padded to 128x128 / 1x128 (lane-dense
    # outputs + full-width MXU shapes). Zero rows/cols keep the math exact.
    w1p = jnp.zeros((LANE, LANE), jnp.float32).at[:F, :P1].set(w1)
    b1p = jnp.zeros((1, LANE), jnp.float32).at[0, :P1].set(b1)
    w2p = jnp.zeros((LANE, LANE), jnp.float32).at[:P1, :P2].set(w2)
    b2p = jnp.zeros((1, LANE), jnp.float32).at[0, :P2].set(b2)

    return (wtoe, bc_tile, poolr, poolc, w1p, b1p, w2p, b2p)


@partial(jax.jit, static_argnames=("F", "P2", "TB"))
def contrastive_forward(x_nchw, expanded, *, F, P2, TB=16):
    """Forward pass: returns (h, z) exactly like the PyTorch module."""
    wtoe, bc_tile, poolr, poolc, w1p, b1p, w2p, b2p = expanded
    B, C, H, W = x_nchw.shape
    WF = W * F
    Bp = ((B + TB - 1) // TB) * TB           # batch padded to a multiple of TB

    # Layout glue: NCHW -> NHWC, 1-row vertical halo (horizontal halo lives in the
    # Toeplitz weights), zero-pad batch, flatten (W, C) into the lane dim, bf16.
    # TODO(synk): fold this pass into the pallas_call input DMA (allow_input_fusion
    # or in-kernel halo construction) to remove the extra HBM round-trip.
    x = jnp.transpose(x_nchw, (0, 2, 3, 1))                        # (B, H, W, C)
    x = jnp.pad(x, ((0, Bp - B), (1, 1), (0, 0), (0, 0)))          # (Bp, H+2, W, C)
    xp = x.reshape(Bp, H + 2, W * C).astype(jnp.bfloat16)

    h_pad, z_pad = pl.pallas_call(
        _contrastive_kernel,
        out_shape=(jax.ShapeDtypeStruct((Bp, LANE), jnp.float32),
                   jax.ShapeDtypeStruct((Bp, LANE), jnp.float32)),
        grid=(Bp // TB,),
        in_specs=[
            # TB padded images per grid step
            pl.BlockSpec((TB, H + 2, W * C), lambda b: (b, 0, 0)),
            # weights: full-array blocks, constant index map -> loaded once, VMEM-resident
            pl.BlockSpec((3, W * C, WF), lambda b: (0, 0, 0)),
            pl.BlockSpec((1, WF), lambda b: (0, 0)),
            pl.BlockSpec((TB, TB * H), lambda b: (0, 0)),
            pl.BlockSpec((WF, LANE), lambda b: (0, 0)),
            pl.BlockSpec((LANE, LANE), lambda b: (0, 0)),
            pl.BlockSpec((1, LANE), lambda b: (0, 0)),
            pl.BlockSpec((LANE, LANE), lambda b: (0, 0)),
            pl.BlockSpec((1, LANE), lambda b: (0, 0)),
        ],
        out_specs=(pl.BlockSpec((TB, LANE), lambda b: (b, 0)),
                   pl.BlockSpec((TB, LANE), lambda b: (b, 0))),
        scratch_shapes=[pltpu.VMEM((TB * H, WF), jnp.float32)],    # conv accumulator
        compiler_params=pltpu.CompilerParams(
            dimension_semantics=("parallel",),        # batch tiles shard across TCs (v7x)
            vmem_limit_bytes=32 * 1024 * 1024),       # well within v5e/v6e/v7x limits
    )(xp, wtoe, bc_tile, poolr, poolc, w1p, b1p, w2p, b2p)

    # Slice the batch and lane padding back off.
    return h_pad[:B, :F], z_pad[:B, :P2]


def init_params(key, C=4, F=32, P1=32, P2=16):
    k1, k2, k3, k4, k5, k6 = jax.random.split(key, 6)
    # conv weight in (kh, kw, c_in, c_out); from PyTorch [F, C, 3, 3]: permute(2, 3, 1, 0).
    w_conv = 0.05 * jax.random.normal(k1, (3, 3, C, F), jnp.float32)
    bc = 0.05 * jax.random.normal(k2, (F,), jnp.float32)
    w1 = 0.05 * jax.random.normal(k3, (F, P1), jnp.float32)
    b1 = 0.05 * jax.random.normal(k4, (P1,), jnp.float32)
    w2 = 0.05 * jax.random.normal(k5, (P1, P2), jnp.float32)
    b2 = 0.05 * jax.random.normal(k6, (P2,), jnp.float32)
    return (w_conv, bc, w1, b1, w2, b2)


def reference_forward(x_nchw, params):
    """Pure-JAX f32 reference for correctness checking."""
    w_conv, bc, w1, b1, w2, b2 = params
    x = jnp.transpose(x_nchw, (0, 2, 3, 1)).astype(jnp.float32)
    feat = jax.lax.conv_general_dilated(
        x, w_conv, window_strides=(1, 1), padding="SAME",
        dimension_numbers=("NHWC", "HWIO", "NHWC"))
    feat = jnp.maximum(feat + bc, 0.0)
    h = feat.mean(axis=(1, 2))
    z1 = jnp.maximum(h @ w1 + b1, 0.0)
    z = z1 @ w2 + b2
    return h, z


if __name__ == "__main__":
    key = jax.random.PRNGKey(0)
    kx, kp = jax.random.split(key)

    B, C, H, W = 32, 4, 16, 16
    F, P1, P2 = 32, 32, 16
    TB = 16                                  # 16 images per grid step -> grid = (2,)
    x = jax.random.normal(kx, (B, C, H, W), jnp.float32)   # NCHW, like PyTorch
    params = init_params(kp, C=C, F=F, P1=P1, P2=P2)

    expanded = prepare_params(params, H, W, TB)
    h, z = contrastive_forward(x, expanded, F=F, P2=P2, TB=TB)
    jax.block_until_ready((h, z))

    assert h.shape == (B, F) and z.shape == (B, P2)

    h_ref, z_ref = reference_forward(x, params)
    # bf16 activations/weights with f32 accumulation -> relaxed tolerance.
    assert jnp.allclose(h, h_ref, atol=5e-3, rtol=1e-2), "h mismatch vs reference"
    assert jnp.allclose(z, z_ref, atol=5e-3, rtol=1e-2), "z mismatch vs reference"

    print("KERNEL_OK")
</pallas_src>

<mosaic_0001>
module attributes {stable_mosaic.version = 11 : i64} {
  func.func @_contrastive_kernel(%arg0: i32, %arg1: memref<16x18x64xbf16, #tpu.memory_space<vmem>>, %arg2: memref<3x64x512xbf16, #tpu.memory_space<vmem>>, %arg3: memref<1x512xf32, #tpu.memory_space<vmem>>, %arg4: memref<16x256xf32, #tpu.memory_space<vmem>>, %arg5: memref<512x128xf32, #tpu.memory_space<vmem>>, %arg6: memref<128x128xf32, #tpu.memory_space<vmem>>, %arg7: memref<1x128xf32, #tpu.memory_space<vmem>>, %arg8: memref<128x128xf32, #tpu.memory_space<vmem>>, %arg9: memref<1x128xf32, #tpu.memory_space<vmem>>, %arg10: memref<16x128xf32, #tpu.memory_space<vmem>>, %arg11: memref<16x128xf32, #tpu.memory_space<vmem>>, %arg12: memref<256x512xf32, #tpu.memory_space<vmem>>) attributes {dimension_semantics = [#tpu.dimension_semantics<parallel>], iteration_bounds = array<i64: 2>, scalar_prefetch = 0 : i64, scratch_operands = 1 : i64, tpu.core_type = #tpu.core_type<tc>, window_params = [{transform_indices = @transform_0, window_bounds = array<i64: 16, 18, 64>}, {pipeline_mode = #tpu.pipeline_mode<synchronous>, transform_indices = @transform_1, window_bounds = array<i64: 3, 64, 512>}, {pipeline_mode = #tpu.pipeline_mode<synchronous>, transform_indices = @transform_2, window_bounds = array<i64: 1, 512>}, {pipeline_mode = #tpu.pipeline_mode<synchronous>, transform_indices = @transform_3, window_bounds = array<i64: 16, 256>}, {pipeline_mode = #tpu.pipeline_mode<synchronous>, transform_indices = @transform_4, window_bounds = array<i64: 512, 128>}, {pipeline_mode = #tpu.pipeline_mode<synchronous>, transform_indices = @transform_5, window_bounds = array<i64: 128, 128>}, {pipeline_mode = #tpu.pipeline_mode<synchronous>, transform_indices = @transform_6, window_bounds = array<i64: 1, 128>}, {pipeline_mode = #tpu.pipeline_mode<synchronous>, transform_indices = @transform_7, window_bounds = array<i64: 128, 128>}, {pipeline_mode = #tpu.pipeline_mode<synchronous>, transform_indices = @transform_8, window_bounds = array<i64: 1, 128>}, {transform_indices = @transform_9, window_bounds = array<i64: 16, 128>}, {transform_indices = @transform_10, window_bounds = array<i64: 16, 128>}]} {
    %c0 = arith.constant 0 : index
    %c0_0 = arith.constant 0 : index
    %c0_1 = arith.constant 0 : index
    %0 = vector.load %arg1[%c0, %c0_0, %c0_1] : memref<16x18x64xbf16, #tpu.memory_space<vmem>>, vector<16x16x64xbf16>
    %1 = vector.shape_cast %0 : vector<16x16x64xbf16> to vector<256x64xbf16>
    %c0_2 = arith.constant 0 : index
    %c0_3 = arith.constant 0 : index
    %c0_4 = arith.constant 0 : index
    %2 = vector.load %arg2[%c0_2, %c0_3, %c0_4] : memref<3x64x512xbf16, #tpu.memory_space<vmem>>, vector<1x64x512xbf16>
    %3 = vector.shape_cast %2 : vector<1x64x512xbf16> to vector<64x512xbf16>
    %cst = arith.constant dense<0.000000e+00> : vector<256x512xf32>
    %4 = tpu.matmul %1, %3, %cst {dimension_numbers = #tpu.dot_dimension_numbers<[1], [0], [0], [1], [0, 0, 1, 1], [], []>} : vector<256x64xbf16>, vector<64x512xbf16>, vector<256x512xf32> -> vector<256x512xf32>
    %c0_5 = arith.constant 0 : index
    %c0_6 = arith.constant 0 : index
    %5 = vector.load %arg12[%c0_5, %c0_6] : memref<256x512xf32, #tpu.memory_space<vmem>>, vector<256x512xf32>
    tpu.vector_store %arg12[%c0_5, %c0_6], %4 {strides = array<i32>} : memref<256x512xf32, #tpu.memory_space<vmem>>, vector<256x512xf32>,
    %c0_7 = arith.constant 0 : index
    %c1 = arith.constant 1 : index
    %c0_8 = arith.constant 0 : index
    %6 = vector.load %arg1[%c0_7, %c1, %c0_8] : memref<16x18x64xbf16, #tpu.memory_space<vmem>>, vector<16x16x64xbf16>
    %7 = vector.shape_cast %6 : vector<16x16x64xbf16> to vector<256x64xbf16>
    %c1_9 = arith.constant 1 : index
    %c0_10 = arith.constant 0 : index
    %c0_11 = arith.constant 0 : index
    %8 = vector.load %arg2[%c1_9, %c0_10, %c0_11] : memref<3x64x512xbf16, #tpu.memory_space<vmem>>, vector<1x64x512xbf16>
    %9 = vector.shape_cast %8 : vector<1x64x512xbf16> to vector<64x512xbf16>
    %cst_12 = arith.constant dense<0.000000e+00> : vector<256x512xf32>
    %10 = tpu.matmul %7, %9, %cst_12 {dimension_numbers = #tpu.dot_dimension_numbers<[1], [0], [0], [1], [0, 0, 1, 1], [], []>} : vector<256x64xbf16>, vector<64x512xbf16>, vector<256x512xf32> -> vector<256x512xf32>
    %c0_13 = arith.constant 0 : index
    %c0_14 = arith.constant 0 : index
    %11 = vector.load %arg12[%c0_13, %c0_14] : memref<256x512xf32, #tpu.memory_space<vmem>>, vector<256x512xf32>
    %12 = arith.addf %11, %10 : vector<256x512xf32>
    %c0_15 = arith.constant 0 : index
    %c0_16 = arith.constant 0 : index
    %13 = vector.load %arg12[%c0_15, %c0_16] : memref<256x512xf32, #tpu.memory_space<vmem>>, vector<256x512xf32>
    tpu.vector_store %arg12[%c0_15, %c0_16], %12 {strides = array<i32>} : memref<256x512xf32, #tpu.memory_space<vmem>>, vector<256x512xf32>,
    %c0_17 = arith.constant 0 : index
    %c2 = arith.constant 2 : index
    %c0_18 = arith.constant 0 : index
    %14 = vector.load %arg1[%c0_17, %c2, %c0_18] : memref<16x18x64xbf16, #tpu.memory_space<vmem>>, vector<16x16x64xbf16>
    %15 = vector.shape_cast %14 : vector<16x16x64xbf16> to vector<256x64xbf16>
    %c2_19 = arith.constant 2 : index
    %c0_20 = arith.constant 0 : index
    %c0_21 = arith.constant 0 : index
    %16 = vector.load %arg2[%c2_19, %c0_20, %c0_21] : memref<3x64x512xbf16, #tpu.memory_space<vmem>>, vector<1x64x512xbf16>
    %17 = vector.shape_cast %16 : vector<1x64x512xbf16> to vector<64x512xbf16>
    %cst_22 = arith.constant dense<0.000000e+00> : vector<256x512xf32>
    %18 = tpu.matmul %15, %17, %cst_22 {dimension_numbers = #tpu.dot_dimension_numbers<[1], [0], [0], [1], [0, 0, 1, 1], [], []>} : vector<256x64xbf16>, vector<64x512xbf16>, vector<256x512xf32> -> vector<256x512xf32>
    %c0_23 = arith.constant 0 : index
    %c0_24 = arith.constant 0 : index
    %19 = vector.load %arg12[%c0_23, %c0_24] : memref<256x512xf32, #tpu.memory_space<vmem>>, vector<256x512xf32>
    %20 = arith.addf %19, %18 : vector<256x512xf32>
    %c0_25 = arith.constant 0 : index
    %c0_26 = arith.constant 0 : index
    %21 = vector.load %arg12[%c0_25, %c0_26] : memref<256x512xf32, #tpu.memory_space<vmem>>, vector<256x512xf32>
    tpu.vector_store %arg12[%c0_25, %c0_26], %20 {strides = array<i32>} : memref<256x512xf32, #tpu.memory_space<vmem>>, vector<256x512xf32>,
    %c0_27 = arith.constant 0 : index
    %c0_28 = arith.constant 0 : index
    %22 = vector.load %arg12[%c0_27, %c0_28] : memref<256x512xf32, #tpu.memory_space<vmem>>, vector<256x512xf32>
    %c0_29 = arith.constant 0 : index
    %c0_30 = arith.constant 0 : index
    %23 = vector.load %arg3[%c0_29, %c0_30] : memref<1x512xf32, #tpu.memory_space<vmem>>, vector<1x512xf32>
    %24 = vector.broadcast %23 : vector<1x512xf32> to vector<256x512xf32>
    %25 = arith.addf %22, %24 : vector<256x512xf32>
    %cst_31 = arith.constant 0.000000e+00 : f32
    %26 = vector.broadcast %cst_31 : f32 to vector<256x512xf32>
    %27 = arith.maximumf %25, %26 : vector<256x512xf32>
    %c0_32 = arith.constant 0 : index
    %c0_33 = arith.constant 0 : index
    %28 = vector.load %arg4[%c0_32, %c0_33] : memref<16x256xf32, #tpu.memory_space<vmem>>, vector<16x256xf32>
    %cst_34 = arith.constant dense<0.000000e+00> : vector<16x512xf32>
    %29 = tpu.matmul %28, %27, %cst_34 {dimension_numbers = #tpu.dot_dimension_numbers<[1], [0], [0], [1], [0, 0, 1, 1], [], []>} : vector<16x256xf32>, vector<256x512xf32>, vector<16x512xf32> -> vector<16x512xf32>
    %c0_35 = arith.constant 0 : index
    %c0_36 = arith.constant 0 : index
    %30 = vector.load %arg5[%c0_35, %c0_36] : memref<512x128xf32, #tpu.memory_space<vmem>>, vector<512x128xf32>
    %cst_37 = arith.constant dense<0.000000e+00> : vector<16x128xf32>
    %31 = tpu.matmul %29, %30, %cst_37 {dimension_numbers = #tpu.dot_dimension_numbers<[1], [0], [0], [1], [0, 0, 1, 1], [], []>} : vector<16x512xf32>, vector<512x128xf32>, vector<16x128xf32> -> vector<16x128xf32>
    %c0_38 = arith.constant 0 : index
    %c0_39 = arith.constant 0 : index
    %32 = vector.load %arg10[%c0_38, %c0_39] : memref<16x128xf32, #tpu.memory_space<vmem>>, vector<16x128xf32>
    tpu.vector_store %arg10[%c0_38, %c0_39], %31 {strides = array<i32>} : memref<16x128xf32, #tpu.memory_space<vmem>>, vector<16x128xf32>,
    %c0_40 = arith.constant 0 : index
    %c0_41 = arith.constant 0 : index
    %33 = vector.load %arg6[%c0_40, %c0_41] : memref<128x128xf32, #tpu.memory_space<vmem>>, vector<128x128xf32>
    %cst_42 = arith.constant dense<0.000000e+00> : vector<16x128xf32>
    %34 = tpu.matmul %31, %33, %cst_42 {dimension_numbers = #tpu.dot_dimension_numbers<[1], [0], [0], [1], [0, 0, 1, 1], [], []>} : vector<16x128xf32>, vector<128x128xf32>, vector<16x128xf32> -> vector<16x128xf32>
    %c0_43 = arith.constant 0 : index
    %c0_44 = arith.constant 0 : index
    %35 = vector.load %arg7[%c0_43, %c0_44] : memref<1x128xf32, #tpu.memory_space<vmem>>, vector<1x128xf32>
    %36 = vector.broadcast %35 : vector<1x128xf32> to vector<16x128xf32>
    %37 = arith.addf %34, %36 : vector<16x128xf32>
    %cst_45 = arith.constant 0.000000e+00 : f32
    %38 = vector.broadcast %cst_45 : f32 to vector<16x128xf32>
    %39 = arith.maximumf %37, %38 : vector<16x128xf32>
    %c0_46 = arith.constant 0 : index
    %c0_47 = arith.constant 0 : index
    %40 = vector.load %arg8[%c0_46, %c0_47] : memref<128x128xf32, #tpu.memory_space<vmem>>, vector<128x128xf32>
    %cst_48 = arith.constant dense<0.000000e+00> : vector<16x128xf32>
    %41 = tpu.matmul %39, %40, %cst_48 {dimension_numbers = #tpu.dot_dimension_numbers<[1], [0], [0], [1], [0, 0, 1, 1], [], []>} : vector<16x128xf32>, vector<128x128xf32>, vector<16x128xf32> -> vector<16x128xf32>
    %c0_49 = arith.constant 0 : index
    %c0_50 = arith.constant 0 : index
    %42 = vector.load %arg9[%c0_49, %c0_50] : memref<1x128xf32, #tpu.memory_space<vmem>>, vector<1x128xf32>
    %43 = vector.broadcast %42 : vector<1x128xf32> to vector<16x128xf32>
    %44 = arith.addf %41, %43 : vector<16x128xf32>
    %c0_51 = arith.constant 0 : index
    %c0_52 = arith.constant 0 : index
    %45 = vector.load %arg11[%c0_51, %c0_52] : memref<16x128xf32, #tpu.memory_space<vmem>>, vector<16x128xf32>
    tpu.vector_store %arg11[%c0_51, %c0_52], %44 {strides = array<i32>} : memref<16x128xf32, #tpu.memory_space<vmem>>, vector<16x128xf32>,
    return
  }
  func.func @transform_0(%arg0: i32) -> (i32, i32, i32) {
    %c0_i32 = arith.constant 0 : i32
    %c0_i32_0 = arith.constant 0 : i32
    %c0_i32_1 = arith.constant 0 : i32
    return %arg0, %c0_i32, %c0_i32_0 : i32, i32, i32
  }
  func.func @transform_1(%arg0: i32) -> (i32, i32, i32) {
    %c0_i32 = arith.constant 0 : i32
    %c0_i32_0 = arith.constant 0 : i32
    %c0_i32_1 = arith.constant 0 : i32
    %c0_i32_2 = arith.constant 0 : i32
    return %c0_i32, %c0_i32_0, %c0_i32_1 : i32, i32, i32
  }
  func.func @transform_2(%arg0: i32) -> (i32, i32) {
    %c0_i32 = arith.constant 0 : i32
    %c0_i32_0 = arith.constant 0 : i32
    %c0_i32_1 = arith.constant 0 : i32
    return %c0_i32, %c0_i32_0 : i32, i32
  }
  func.func @transform_3(%arg0: i32) -> (i32, i32) {
    %c0_i32 = arith.constant 0 : i32
    %c0_i32_0 = arith.constant 0 : i32
    %c0_i32_1 = arith.constant 0 : i32
    return %c0_i32, %c0_i32_0 : i32, i32
  }
  func.func @transform_4(%arg0: i32) -> (i32, i32) {
    %c0_i32 = arith.constant 0 : i32
    %c0_i32_0 = arith.constant 0 : i32
    %c0_i32_1 = arith.constant 0 : i32
    return %c0_i32, %c0_i32_0 : i32, i32
  }
  func.func @transform_5(%arg0: i32) -> (i32, i32) {
    %c0_i32 = arith.constant 0 : i32
    %c0_i32_0 = arith.constant 0 : i32
    %c0_i32_1 = arith.constant 0 : i32
    return %c0_i32, %c0_i32_0 : i32, i32
  }
  func.func @transform_6(%arg0: i32) -> (i32, i32) {
    %c0_i32 = arith.constant 0 : i32
    %c0_i32_0 = arith.constant 0 : i32
    %c0_i32_1 = arith.constant 0 : i32
    return %c0_i32, %c0_i32_0 : i32, i32
  }
  func.func @transform_7(%arg0: i32) -> (i32, i32) {
    %c0_i32 = arith.constant 0 : i32
    %c0_i32_0 = arith.constant 0 : i32
    %c0_i32_1 = arith.constant 0 : i32
    return %c0_i32, %c0_i32_0 : i32, i32
  }
  func.func @transform_8(%arg0: i32) -> (i32, i32) {
    %c0_i32 = arith.constant 0 : i32
    %c0_i32_0 = arith.constant 0 : i32
    %c0_i32_1 = arith.constant 0 : i32
    return %c0_i32, %c0_i32_0 : i32, i32
  }
  func.func @transform_9(%arg0: i32) -> (i32, i32) {
    %c0_i32 = arith.constant 0 : i32
    %c0_i32_0 = arith.constant 0 : i32
    return %arg0, %c0_i32 : i32, i32
  }
  func.func @transform_10(%arg0: i32) -> (i32, i32) {
    %c0_i32 = arith.constant 0 : i32
    %c0_i32_0 = arith.constant 0 : i32
    return %arg0, %c0_i32 : i32, i32
  }
}

</mosaic_0001>

<bundles_post_ra>
// kernel: contrastive_forward.1
= control target key start
LH: loop header
LB: loop body
LE: loop exit
PB: predicated region body
PF: predicated region fallthrough
CT: control target
= control target key end

     0   :  { %16 = vsyncpa [#allocation4], 0  ;;  %s7162_s0 = inlined_call_operand.vmem [shape: bf16[32,18,64], index: 0, kind: input, shape index: {}]   ;;  %s7163_s1 = inlined_call_operand.vmem [shape: bf16[3,64,512], index: 1, kind: input, shape index: {}]   ;;  %s7164_s2 = inlined_call_operand.vmem [shape: f32[1,512], index: 2, kind: input, shape index: {}]   ;;  %s7165_s3 = inlined_call_operand.vmem [shape: f32[16,256], index: 3, kind: input, shape index: {}]   ;;  %s7166_s4 = inlined_call_operand.vmem [shape: f32[512,128], index: 4, kind: input, shape index: {}]   ;;  %s7167_s5 = inlined_call_operand.vmem [shape: f32[128,128], index: 5, kind: input, shape index: {}]   ;;  %s7168_s6 = inlined_call_operand.vmem [shape: f32[1,128], index: 6, kind: input, shape index: {}]   ;;  %s7169_s7 = inlined_call_operand.vmem [shape: f32[128,128], index: 7, kind: input, shape index: {}]   ;;  %s7170_s8 = inlined_call_operand.vmem [shape: f32[1,128], index: 8, kind: input, shape index: {}]   ;;  %s7171_s9 = inlined_call_operand.hbm [shape: f32[32,128], index: 9, kind: output, shape index: {0}]   ;;  %s7172_s10 = inlined_call_operand.vmem [shape: f32[32,128], index: 10, kind: output, shape index: {1}]  }
   0x1   :  { %18 = vsyncpa [#allocation4 + $0x1], 0  ;;  %s6017_s13 = smov 0   ;;  %s6019_s14 = smov 0  }
   0x2   :  { %s6021_s15 = smov 0   ;;  %s6023_s16 = smov 0  }
   0x3 LB: > { %s6038_s17 = sadd.s32 4294967295, %s5956_s16   ;;  %s4812_s18 = sadd.s32 4294967294, %s5956_s16   ;;  %s5956_s16 = sphi %s6023_s16, %s7184_s16   ;;  %s5952_s15 = sphi %s6021_s15, %s7183_s15   ;;  %s5948_s14 = sphi %s6019_s14, %s7182_s14   ;;  %s5944_s13 = sphi %s6017_s13, %s7181_s13  }
   0x4   : > { %s6042_s19 = sadd.s32 1, %s5956_s16   ;;  %s225_s20 = sadd.s32 1, %s5952_s15 }
   0x5   : > { %s222_s21 = ssub.s32 %s5956_s16, %s6042_s19  ;;  %p235_p0 = scmp.ne.s32.totalorder %s5952_s15, %s5948_s14 }
   0x6   : > { %p223_p1 = scmp.eq.s32.totalorder %s222_s21, 0  ;;  %p236_p2 = scmp.eq.s32.totalorder %s6038_s17, 1 }
   0x7   : > { %p241_p3 = scmp.ne.s32.totalorder %s5948_s14, %s5944_s13  ;;  %p242_p4 = scmp.eq.s32.totalorder %s4812_s18, 1 }
   0x8   : > { %s6053_s22 = scalar_select %p223_p1, %s5952_s15, %s225_s20  }
   0x9   : > { %p6055_p5 = por %p236_p2, %p235_p0  ;;  %p6059_p6 = por %p242_p4, %p241_p3 }
   0xa   : > { %7173 = sst [smem:[#allocation6_spill]] %s6053_s22  ;;  %p4815_p7 = scmp.ge.s32.totalorder %s5956_s16, 1 }
   0xb   : > { %p320_p8 = scmp.lt.s32.totalorder %s5956_s16, 3 }
   0xd   : > { %p321_p9 = pnand %p4815_p7, %p320_p8 }
   0xe   : > { %v5806_v0 = vld [vmem:[%s7163_s1 + $0x4] ss:$16 sps:$4 sm:$0xff] (!%p321_p9)   ;;  %s4817_s27 = sshll.u32 (!%p321_p9), %s6038_s17, 4  ;;  %v5808_v1 = vld [vmem:[%s7163_s1 + $0xc] ss:$16 sps:$4 sm:$0xff] (!%p321_p9)   ;;  %v5958_v2 = vmov (!%p321_p9), 0  }
   0xf   : > { %324 = sbr.rel (%p321_p9) target bundleno = 1502 (0x5de), region = 56  ;;  %668 = vmatprep.mubr.bf16.mxu0 (!%p321_p9), %v5958_v2  ;;  %861 = vmatprep.mubr.bf16.mxu1 (!%p321_p9), %v5958_v2  ;;  %p365_p10 = scmp.lt.s32.totalorder (!%p321_p9), %s4817_s27, 31  ;;  %v5810_v3 = vld [vmem:[%s7163_s1] ss:$16 sps:$4 sm:$0xff] (!%p321_p9)   ;;  %v5811_v4 = vld [vmem:[%s7163_s1 + $0x8] ss:$16 sps:$4 sm:$0xff] (!%p321_p9)  }
  0x10   : > { %636 = vmatprep.subr.bf16.mxu0 (!%p321_p9), %v5806_v0  ;;  %829 = vmatprep.subr.bf16.mxu1 (!%p321_p9), %v5808_v1  ;;  %v5812_v5 = vld [vmem:[%s7163_s1 + $0x24] ss:$16 sps:$4 sm:$0xff] (!%p321_p9)   ;;  %v5814_v6 = vld [vmem:[%s7163_s1 + $0x2c] ss:$16 sps:$4 sm:$0xff] (!%p321_p9)   ;;  %v5816_v7 = vld [vmem:[%s7163_s1 + $0x20] ss:$16 sps:$4 sm:$0xff] (!%p321_p9)  }
  0x11   : > { %637 = vmatpush1.bf16.msra.mxu0 (!%p321_p9), %v5810_v3  ;;  %830 = vmatpush1.bf16.msra.mxu1 (!%p321_p9), %v5811_v4  ;;  %v5817_v8 = vld [vmem:[%s7163_s1 + $0x28] ss:$16 sps:$4 sm:$0xff] (!%p321_p9)   ;;  %v5818_v9 = vld [vmem:[%s7163_s1 + $0x44] ss:$16 sps:$4 sm:$0xff] (!%p321_p9)   ;;  %v5820_v10 = vld [vmem:[%s7163_s1 + $0x4c] ss:$16 sps:$4 sm:$0xff] (!%p321_p9)  }
  0x12   : > { %638 = vmatprep.subr.bf16.mxu0 (!%p321_p9), %v5812_v5  ;;  %831 = vmatprep.subr.bf16.mxu1 (!%p321_p9), %v5814_v6  ;;  %v5822_v11 = vld [vmem:[%s7163_s1 + $0x40] ss:$16 sps:$4 sm:$0xff] (!%p321_p9)   ;;  %v5823_v12 = vld [vmem:[%s7163_s1 + $0x48] ss:$16 sps:$4 sm:$0xff] (!%p321_p9)   ;;  %v5824_v13 = vld [vmem:[%s7163_s1 + $0x64] ss:$16 sps:$4 sm:$0xff] (!%p321_p9)  }
  0x13   : > { %v5826_v14 = vld [vmem:[%s7163_s1 + $0x6c] ss:$16 sps:$4 sm:$0xff] (!%p321_p9)   ;;  %v5828_v15 = vld [vmem:[%s7163_s1 + $0x60] ss:$16 sps:$4 sm:$0xff] (!%p321_p9)   ;;  %v5829_v16 = vld [vmem:[%s7163_s1 + $0x68] ss:$16 sps:$4 sm:$0xff] (!%p321_p9)  }
  0x14   : > { %vm587_vm0 = vcmask (!%p321_p9), 523264   ;;  %v5833_v18 = vld [vmem:[%s7163_s1 + $0x84] ss:$16 sps:$4 sm:$0xff] (!%p321_p9)   ;;  %v5836_v19 = vld [vmem:[%s7163_s1 + $0x8c] ss:$16 sps:$4 sm:$0xff] (!%p321_p9)   ;;  %vm2644_vm4 = vcmask (!%p321_p9), 1042432  }
  0x15   : > { %639 = vmatpush1.bf16.msra.mxu0 (!%p321_p9), %v5816_v7  ;;  %832 = vmatpush1.bf16.msra.mxu1 (!%p321_p9), %v5817_v8  ;;  %v5831_v20 = vld [vmem:[%s7163_s1 + $0x80] ss:$16 sps:$4 sm:$0xff] (!%p321_p9)   ;;  %v5834_v21 = vld [vmem:[%s7163_s1 + $0x88] ss:$16 sps:$4 sm:$0xff] (!%p321_p9)   ;;  %v5843_v23 = vld [vmem:[%s7163_s1 + $0xa4] ss:$16 sps:$4 sm:$0xff] (!%p321_p9)  }
  0x16   : > { %s7186_s27 = smov (!%p365_p10, %s4817_s27), 31  ;;  %640 = vmatprep.subr.bf16.mxu0 %v5818_v9  ;;  %833 = vmatprep.subr.bf16.mxu1 %v5820_v10  ;;  %v5841_v22 = vld [vmem:[%s7163_s1 + $0xa0] ss:$16 sps:$4 sm:$0xff]   ;;  %v5844_v24 = vld [vmem:[%s7163_s1 + $0xa8] ss:$16 sps:$4 sm:$0xff]   ;;  %vm2645_vm5 = vcmask 1046532  }
  0x17   : > { %s5763_s12 = smul.u32 12, %s7186_s27  ;;  %v5846_v25 = vld [vmem:[%s7163_s1 + $0xac] ss:$16 sps:$4 sm:$0xff]   ;;  %v5851_v27 = vld [vmem:[%s7163_s1 + $0xc0] ss:$16 sps:$4 sm:$0xff]   ;;  %vm6480_vm6 = vmor %vm2644_vm4, %vm2645_vm5  ;;  %s354_s11 = sand.u32 1, %s5948_s14  }
  0x18   : > { %v5853_v28 = vld [vmem:[%s7163_s1 + $0xc4] ss:$16 sps:$4 sm:$0xff]   ;;  %v5854_v29 = vld [vmem:[%s7163_s1 + $0xc8] ss:$16 sps:$4 sm:$0xff]   ;;  %v5856_v30 = vld [vmem:[%s7163_s1 + $0xcc] ss:$16 sps:$4 sm:$0xff]  }
  0x19   : > { %s6113_s21 = scalar_lea.vmem %s7162_s0, %s5763_s12  ;;  %641 = vmatpush1.bf16.msra.mxu0 %v5822_v11  ;;  %834 = vmatpush1.bf16.msra.mxu1 %v5823_v12  ;;  %v5861_v32 = vld [vmem:[%s7163_s1 + $0xe0] ss:$16 sps:$4 sm:$0xff]   ;;  %v5863_v33 = vld [vmem:[%s7163_s1 + $0xe4] ss:$16 sps:$4 sm:$0xff]   ;;  %v5864_v34 = vld [vmem:[%s7163_s1 + $0xe8] ss:$16 sps:$4 sm:$0xff]  }
  0x1a   : > { %642 = vmatprep.subr.bf16.mxu0 %v5824_v13  ;;  %835 = vmatprep.subr.bf16.mxu1 %v5826_v14  ;;  %v5830_v17 = vld [vmem:[%s6113_s21] sm:$0xff]   ;;  %v5837_v26 = vld [vmem:[%s6113_s21 + $0xc] sm:$0xff]   ;;  %v5838_v31 = vld [vmem:[%s6113_s21 + $0x18] sm:$0xff]   ;;  %vm1198_vm1 = vsmask.f32 3328  ;;  %s4816_s18 = sshll.u32 %s354_s11, 4 }
  0x1b   : > { %v5866_v35 = vld [vmem:[%s7163_s1 + $0xec] ss:$16 sps:$4 sm:$0xff]   ;;  %v5839_v36 = vld [vmem:[%s6113_s21 + $0x24] sm:$0xff]   ;;  %v5840_v39 = vld [vmem:[%s6113_s21 + $0x30] sm:$0xff]   ;;  %vm1199_vm2 = vsmask.f32 7440 }
  0x1c   : > { %v5872_v37 = vld [vmem:[%s7163_s1 + $0x104] ss:$16 sps:$4 sm:$0xff]   ;;  %v5875_v38 = vld [vmem:[%s7163_s1 + $0x10c] ss:$16 sps:$4 sm:$0xff]   ;;  %v1150_v49 = vld [vmem:[%s6113_s21] sm:$0xf] }
  0x1d   : > { %643 = vmatpush1.bf16.msra.mxu0 %v5828_v15  ;;  %836 = vmatpush1.bf16.msra.mxu1 %v5829_v16  ;;  %v5847_v40 = vld [vmem:[%s6113_s21 + $0x3c] sm:$0xff]   ;;  %v5848_v41 = vld [vmem:[%s6113_s21 + $0x48] sm:$0xff]   ;;  %v5849_v42 = vld [vmem:[%s6113_s21 + $0x54] sm:$0xff]   ;;  %v1202_v51 = vshrl.u32 %v1150_v49, 16  ;;  %v1205_v52 = vshll.u32 %v1150_v49, 16  ;;  %s356_s22 = scalar_lea.vmem [#allocation3], %s4816_s18 }
  0x1e   : > { %1778 = vmatprep.subr.bf16.mxu0 %v5833_v18  ;;  %1971 = vmatprep.subr.bf16.mxu1 %v5836_v19  ;;  %v5850_v43 = vld [vmem:[%s6113_s21 + $0x60] sm:$0xff]   ;;  %v5857_v44 = vld [vmem:[%s6113_s21 + $0x6c] sm:$0xff]   ;;  %v5858_v45 = vld [vmem:[%s6113_s21 + $0x78] sm:$0xff]   ;;  %s4721_s27 = sshll.u32 %s356_s22, 4  ;;  %s5068_s30 = sshll.u32 %s6038_s17, 8  ;;  %s7104_s27 = int_to_ptr.vmem [resolvable:$true] %s4721_s27 }
  0x1f   : > { %v5859_v46 = vld [vmem:[%s6113_s21 + $0x84] sm:$0xff]   ;;  %v5860_v47 = vld [vmem:[%s6113_s21 + $0x90] sm:$0xff]   ;;  %v5867_v48 = vld [vmem:[%s6113_s21 + $0x9c] sm:$0xff]   ;;  %v1204_v56 = vrot.slane %v1202_v51, 4  ;;  %v1207_v57 = vrot.slane %v1205_v52, 5  ;;  %s7110_s20 = scalar_lea.hbm %s7171_s9, %s5068_s30  ;;  %s7114_s25 = scalar_lea.sflag [#allocation4], %s354_s11 }
  0x20   : > { %4853 = vmatmul.mubr.msk.bf16.vlgmr.msra.gmra.mrb[0].mxu0 %vm587_vm0, %v5830_v17  ;;  %4869 = vmatmul.mubr.msk.bf16.vlgmr.msra.gmra.mrb[0].mxu1 %vm587_vm0, %v5830_v17  ;;  %v1151_v50 = vld [vmem:[%s6113_s21 + $0x4] sm:$0xf]  ;;  %v5868_v55 = vld [vmem:[%s6113_s21 + $0xa8] sm:$0xff]   ;;  %v1154_v62 = vld [vmem:[%s6113_s21 + $0x10] sm:$0xf]  ;;  %s5894_s26 = scalar_lea.vmem %s7104_s27, 256 }
  0x21   : > { %1779 = vmatpush1.bf16.msra.mxu0 %v5831_v20  ;;  %1972 = vmatpush1.bf16.msra.mxu1 %v5834_v21  ;;  %v1211_v53 = vshll.u32 %v1151_v50, 16  ;;  %v1215_v54 = vshrl.u32 %v1151_v50, 16  ;;  %v1153_v60 = vld [vmem:[%s6113_s21 + $0xc] sm:$0xf]  ;;  %v1152_v61 = vld [vmem:[%s6113_s21 + $0x8] sm:$0x1]  ;;  %v1208_v63 = vor.u32 %v1207_v57, %v1204_v56  ;;  %vm6257_vm3 = vmor %vm1198_vm1, %vm1199_vm2  ;;  %p5895_p11 = scmp.ne.s32.totalorder %s7104_s27, %s5894_s26 }
  0x22   : > { %678 = vmatprep.mubr.bf16.mxu0 %v5958_v2  ;;  %871 = vmatprep.mubr.bf16.mxu1 %v5958_v2  ;;  %v1226_v0 = vshrl.u32 %v1153_v60, 16  ;;  %v1229_v1 = vshll.u32 %v1153_v60, 16  ;;  %v1221_v4 = vshll.u32 %v1152_v61, 16  ;;  %v1235_v5 = vshll.u32 %v1154_v62, 16  ;;  %v5869_v7 = vld [vmem:[%s6113_s21 + $0xb4] sm:$0xff]  }
  0x23   : > { %1780 = vmatprep.subr.bf16.mxu0 %v5843_v23  ;;  %1973 = vmatprep.subr.bf16.mxu1 %v5846_v25  ;;  %v1213_v58 = vrot.slane %v1211_v53, 5  ;;  %v1217_v59 = vrot.slane %v1215_v54, 4  ;;  %v1239_v6 = vshrl.u32 %v1154_v62, 16  ;;  %v1209_v8 = vrot.slane %v1208_v63, 4  ;;  %v1155_v9 = vld [vmem:[%s6113_s21 + $0x14] sm:$0x1]  ;;  %p5896_p12 = pnand %p5895_p11, %p6055_p5 }
  0x24   : > { %v1228_v10 = vrot.slane %v1226_v0, 4  ;;  %v1231_v11 = vrot.slane %v1229_v1, 5  ;;  %v1223_v14 = vrot.slane %v1221_v4, 5  ;;  %v1237_v15 = vrot.slane %v1235_v5, 5  ;;  %v1156_v17 = vld [vmem:[%s6113_s21 + $0x18] sm:$0xf] }
  0x25   : > { %1781 = vmatpush1.bf16.msra.mxu0 %v5841_v22  ;;  %1974 = vmatpush1.bf16.msra.mxu1 %v5844_v24  ;;  %v1218_v3 = vor.u32 %v1217_v59, %v1213_v58  ;;  %v1241_v16 = vrot.slane %v1239_v6, 4  ;;  %v1157_v18 = vld [vmem:[%s6113_s21 + $0x1c] sm:$0xf]  ;;  %v1245_v19 = vshll.u32 %v1155_v9, 16  ;;  %v1214_v20 = vsel %vm6257_vm3, %v1209_v8, %v1213_v58  ;;  %v5876_v52 = vld [vmem:[%s7163_s1 + $0x120] ss:$16 sps:$4 sm:$0xff]   ;;  %p5897_p13 = pneg %p5896_p12 }
  0x26   : > { %1782 = vmatprep.subr.bf16.mxu0 %v5853_v28  ;;  %1975 = vmatprep.subr.bf16.mxu1 %v5856_v30  ;;  %v1232_v21 = vor.u32 %v1231_v11, %v1228_v10  ;;  %v1250_v22 = vshrl.u32 %v1156_v17, 16  ;;  %v1253_v23 = vshll.u32 %v1156_v17, 16  ;;  %v5870_v28 = vld [vmem:[%s7163_s1 + $0x100] ss:$16 sps:$4 sm:$0xff]   ;;  %v5879_v53 = vld [vmem:[%s7163_s1 + $0x128] ss:$16 sps:$4 sm:$0xff]  }
  0x27   : > { %v1219_v13 = vrot.slane %v1218_v3, 4  ;;  %v1242_v25 = vor.u32 %v1241_v16, %v1237_v15  ;;  %v5884_v54 = vld [vmem:[%s7163_s1 + $0x144] ss:$16 sps:$4 sm:$0xff]   ;;  %v1161_v58 = vld [vmem:[%s6113_s21 + $0x2c] sm:$0x1] }
  0x28   : > { %4854 = vmatmul.mubr.msk.bf16.gmra.mrb[4].mxu0 %vm587_vm0, %v5837_v26  ;;  %4870 = vmatmul.mubr.msk.bf16.gmra.mrb[4].mxu1 %vm587_vm0, %v5837_v26  ;;  %v1259_v26 = vshll.u32 %v1157_v18, 16  ;;  %v1162_v1 = vld [vmem:[%s6113_s21 + $0x30] sm:$0xf]  ;;  %v1163_v3 = vld [vmem:[%s6113_s21 + $0x34] sm:$0xf]  ;;  %v1293_v6 = vshll.u32 %v1161_v58, 16 }
  0x29   : > { %688 = vmatprep.mubr.bf16.mxu0 %v5958_v2  ;;  %881 = vmatprep.mubr.bf16.mxu1 %v5958_v2  ;;  %v1224_v24 = vsel %vm6257_vm3, %v1219_v13, %v1223_v14  ;;  %v5882_v4 = vld [vmem:[%s7163_s1 + $0x140] ss:$16 sps:$4 sm:$0xff]   ;;  %v5885_v5 = vld [vmem:[%s7163_s1 + $0x148] ss:$16 sps:$4 sm:$0xff]   ;;  %v5893_v8 = vld [vmem:[%s7163_s1 + $0x16c] ss:$16 sps:$4 sm:$0xff]  }
  0x2a   : > { %1783 = vmatpush1.bf16.msra.mxu0 %v5851_v27  ;;  %1976 = vmatpush1.bf16.msra.mxu1 %v5854_v29  ;;  %v1263_v27 = vshrl.u32 %v1157_v18, 16  ;;  %v5873_v29 = vld [vmem:[%s7163_s1 + $0x108] ss:$16 sps:$4 sm:$0xff]   ;;  %v4901_v30 = vcombine.low %v1214_v20, %v1224_v24  ;;  %v1298_v11 = vshrl.u32 %v1162_v1, 16  ;;  %v1301_v13 = vshll.u32 %v1162_v1, 16 }
  0x2b   : > { %1784 = vmatprep.subr.bf16.mxu0 %v5863_v33  ;;  %1977 = vmatprep.subr.bf16.mxu1 %v5866_v35  ;;  %v1252_v33 = vrot.slane %v1250_v22, 4  ;;  %v1243_v35 = vrot.slane %v1242_v25, 4  ;;  %v1307_v16 = vshll.u32 %v1163_v3, 16  ;;  %v1311_v17 = vshrl.u32 %v1163_v3, 16  ;;  %v5888_v18 = vld [vmem:[%s7163_s1 + $0x160] ss:$16 sps:$4 sm:$0xff]  }
  0x2c   : > { %v1295_v22 = vrot.slane %v1293_v6, 5  ;;  %v1165_v24 = vld [vmem:[%s6113_s21 + $0x3c] sm:$0xf]  ;;  %v1171_v6 = vld [vmem:[%s6113_s21 + $0x54] sm:$0xf] }
  0x2e   : > { %1785 = vmatpush1.bf16.msra.mxu0 %v5861_v32  ;;  %1978 = vmatpush1.bf16.msra.mxu1 %v5864_v34  ;;  %v1158_v32 = vld [vmem:[%s6113_s21 + $0x20] sm:$0x1]  ;;  %v1255_v34 = vrot.slane %v1253_v23, 5  ;;  %v1300_v23 = vrot.slane %v1298_v11, 4 }
  0x2f   : > { %2952 = vmatprep.subr.bf16.mxu0 %v5872_v37  ;;  %3145 = vmatprep.subr.bf16.mxu1 %v5875_v38  ;;  %v6278_v37 = vrot.slane %v1259_v26, 5  ;;  %v1265_v38 = vrot.slane %v1263_v27, 4  ;;  %v1303_v26 = vrot.slane %v1301_v13, 5  ;;  %v1309_v27 = vrot.slane %v1307_v16, 5 }
  0x30   : > { %4855 = vmatmul.mubr.msk.bf16.gmra.mrb[8].mxu0 %vm587_vm0, %v5838_v31  ;;  %4871 = vmatmul.mubr.msk.bf16.gmra.mrb[8].mxu1 %vm587_vm0, %v5838_v31  ;;  %v1233_v31 = vrot.slane %v1232_v21, 4  ;;  %v1370_v13 = vshrl.u32 %v1171_v6, 16 }
  0x31   : > { %698 = vmatprep.mubr.bf16.mxu0 %v5958_v2  ;;  %891 = vmatprep.mubr.bf16.mxu1 %v5958_v2  ;;  %v1266_v49 = vor.u32 %v1265_v38, %v6278_v37 }
  0x33   : > { %v1267_v61 = vrot.slane %v1266_v49, 4  ;;  %v1168_v49 = vld [vmem:[%s6113_s21 + $0x48] sm:$0xf] }
  0x38   : > { %4856 = vmatmul.mubr.msk.bf16.gmra.mrb[12].mxu0 %vm587_vm0, %v5839_v36  ;;  %4872 = vmatmul.mubr.msk.bf16.gmra.mrb[12].mxu1 %vm587_vm0, %v5839_v36  ;;  %v1247_v36 = vrot.slane %v1245_v19, 5  ;;  %v5891_v19 = vld [vmem:[%s7163_s1 + $0x168] ss:$16 sps:$4 sm:$0xff]  }
  0x39   : > { %708 = vmatprep.mubr.bf16.mxu0 %v5958_v2  ;;  %901 = vmatprep.mubr.bf16.mxu1 %v5958_v2 }
  0x40   : > { %4857 = vmatmul.mubr.msk.bf16.gmra.mrb[16].mxu0 %vm587_vm0, %v5840_v39  ;;  %4873 = vmatmul.mubr.msk.bf16.gmra.mrb[16].mxu1 %vm587_vm0, %v5840_v39  ;;  %v1159_v39 = vld [vmem:[%s6113_s21 + $0x24] sm:$0xf] }
  0x41   : > { %718 = vmatprep.mubr.bf16.mxu0 %v5958_v2  ;;  %911 = vmatprep.mubr.bf16.mxu1 %v5958_v2 }
  0x48   : > { %4858 = vmatmul.mubr.msk.bf16.gmra.mrb[20].mxu0 %vm587_vm0, %v5847_v40  ;;  %4874 = vmatmul.mubr.msk.bf16.gmra.mrb[20].mxu1 %vm587_vm0, %v5847_v40  ;;  %v1160_v40 = vld [vmem:[%s6113_s21 + $0x28] sm:$0xf] }
  0x49   : > { %728 = vmatprep.mubr.bf16.mxu0 %v5958_v2  ;;  %921 = vmatprep.mubr.bf16.mxu1 %v5958_v2  ;;  %v1283_v50 = vshll.u32 %v1160_v40, 16  ;;  %v1287_v51 = vshrl.u32 %v1160_v40, 16 }
  0x4b   : > { %v1285_v63 = vrot.slane %v1283_v50, 5  ;;  %v1289_v0 = vrot.slane %v1287_v51, 4  ;;  %v1169_v50 = vld [vmem:[%s6113_s21 + $0x4c] sm:$0xf] }
  0x4c   : > { %v1355_v58 = vshll.u32 %v1169_v50, 16 }
  0x50   : > { %4859 = vmatmul.mubr.msk.bf16.gmra.mrb[24].mxu0 %vm587_vm0, %v5848_v41  ;;  %4875 = vmatmul.mubr.msk.bf16.gmra.mrb[24].mxu1 %vm587_vm0, %v5848_v41  ;;  %v1269_v41 = vshll.u32 %v1158_v32, 16  ;;  %v1325_v32 = vshll.u32 %v1165_v24, 16 }
  0x51   : > { %738 = vmatprep.mubr.bf16.mxu0 %v5958_v2  ;;  %931 = vmatprep.mubr.bf16.mxu1 %v5958_v2 }
  0x52   : > { %v1271_v62 = vrot.slane %v1269_v41, 5  ;;  %v1327_v41 = vrot.slane %v1325_v32, 5 }
  0x54   : > { %v1272_v14 = vsel %vm6257_vm3, %v1267_v61, %v1271_v62 }
  0x58   : > { %4860 = vmatmul.mubr.msk.bf16.gmra.mrb[28].mxu0 %vm587_vm0, %v5849_v42  ;;  %4876 = vmatmul.mubr.msk.bf16.gmra.mrb[28].mxu1 %vm587_vm0, %v5849_v42  ;;  %v5878_v42 = vld [vmem:[%s7163_s1 + $0x124] ss:$16 sps:$4 sm:$0xff]  }
  0x59   : > { %748 = vmatprep.mubr.bf16.mxu0 %v5958_v2  ;;  %941 = vmatprep.mubr.bf16.mxu1 %v5958_v2 }
  0x60   : > { %4861 = vmatmul.mubr.msk.bf16.gmra.mrb[32].mxu0 %vm587_vm0, %v5850_v43  ;;  %4877 = vmatmul.mubr.msk.bf16.gmra.mrb[32].mxu1 %vm587_vm0, %v5850_v43  ;;  %v5881_v43 = vld [vmem:[%s7163_s1 + $0x12c] ss:$16 sps:$4 sm:$0xff]  }
  0x61   : > { %758 = vmatprep.mubr.bf16.mxu0 %v5958_v2  ;;  %951 = vmatprep.mubr.bf16.mxu1 %v5958_v2 }
  0x68   : > { %4862 = vmatmul.mubr.msk.bf16.gmra.mrb[36].mxu0 %vm587_vm0, %v5857_v44  ;;  %4878 = vmatmul.mubr.msk.bf16.gmra.mrb[36].mxu1 %vm587_vm0, %v5857_v44  ;;  %v1238_v44 = vsel %vm6257_vm3, %v1233_v31, %v1237_v15  ;;  %v1290_v15 = vor.u32 %v1289_v0, %v1285_v63  ;;  %v1322_v31 = vshrl.u32 %v1165_v24, 16  ;;  %v1170_v0 = vld [vmem:[%s6113_s21 + $0x50] sm:$0x1] }
  0x69   : > { %768 = vmatprep.mubr.bf16.mxu0 %v5958_v2  ;;  %961 = vmatprep.mubr.bf16.mxu1 %v5958_v2 }
  0x6a   : > { %v1291_v25 = vrot.slane %v1290_v15, 4  ;;  %v1324_v40 = vrot.slane %v1322_v31, 4  ;;  %v1373_v15 = vshll.u32 %v1171_v6, 16 }
  0x6c   : > { %v1328_v51 = vor.u32 %v1327_v41, %v1324_v40 }
  0x70   : > { %4863 = vmatmul.mubr.msk.bf16.gmra.mrb[40].mxu0 %vm587_vm0, %v5858_v45  ;;  %4879 = vmatmul.mubr.msk.bf16.gmra.mrb[40].mxu1 %vm587_vm0, %v5858_v45  ;;  %v1256_v45 = vor.u32 %v1255_v34, %v1252_v33 }
  0x71   : > { %778 = vmatprep.mubr.bf16.mxu0 %v5958_v2  ;;  %971 = vmatprep.mubr.bf16.mxu1 %v5958_v2 }
  0x72   : > { %v1257_v57 = vrot.slane %v1256_v45, 4 }
  0x74   : > { %v1262_v9 = vsel %vm6257_vm3, %v1257_v57, %v6278_v37  ;;  %v1304_v37 = vor.u32 %v1303_v26, %v1300_v23  ;;  %v1372_v23 = vrot.slane %v1370_v13, 4 }
  0x75   : > { %v4903_v20 = vcombine.low %v1262_v9, %v1272_v14 }
  0x78   : > { %4864 = vmatmul.mubr.msk.bf16.gmra.mrb[44].mxu0 %vm587_vm0, %v5859_v46  ;;  %4880 = vmatmul.mubr.msk.bf16.gmra.mrb[44].mxu1 %vm587_vm0, %v5859_v46  ;;  %v1274_v46 = vshrl.u32 %v1159_v39, 16 }
  0x79   : > { %788 = vmatprep.mubr.bf16.mxu0 %v5958_v2  ;;  %981 = vmatprep.mubr.bf16.mxu1 %v5958_v2 }
  0x7a   : > { %v1276_v59 = vrot.slane %v1274_v46, 4  ;;  %v1305_v46 = vrot.slane %v1304_v37, 4 }
  0x80   : > { %4865 = vmatmul.mubr.msk.bf16.gmra.mrb[48].mxu0 %vm587_vm0, %v5860_v47  ;;  %4881 = vmatmul.mubr.msk.bf16.gmra.mrb[48].mxu1 %vm587_vm0, %v5860_v47  ;;  %v1277_v47 = vshll.u32 %v1159_v39, 16 }
  0x81   : > { %798 = vmatprep.mubr.bf16.mxu0 %v5958_v2  ;;  %991 = vmatprep.mubr.bf16.mxu1 %v5958_v2 }
  0x82   : > { %v1279_v60 = vrot.slane %v1277_v47, 5 }
  0x84   : > { %v1280_v10 = vor.u32 %v1279_v60, %v1276_v59  ;;  %v1359_v59 = vshrl.u32 %v1169_v50, 16  ;;  %v1329_v60 = vrot.slane %v1328_v51, 4 }
  0x86   : > { %v1281_v21 = vrot.slane %v1280_v10, 4 }
  0x88   : > { %4866 = vmatmul.mubr.msk.bf16.gmra.mrb[52].mxu0 %vm587_vm0, %v5867_v48  ;;  %4882 = vmatmul.mubr.msk.bf16.gmra.mrb[52].mxu1 %vm587_vm0, %v5867_v48  ;;  %v1248_v48 = vsel %vm6257_vm3, %v1243_v35, %v1247_v36  ;;  %v1286_v33 = vsel %vm6257_vm3, %v1281_v21, %v1285_v63  ;;  %v1296_v36 = vsel %vm6257_vm3, %v1291_v25, %v1295_v22  ;;  %v1375_v25 = vrot.slane %v1373_v15, 5 }
  0x89   : > { %808 = vmatprep.mubr.bf16.mxu0 %v5958_v2  ;;  %1001 = vmatprep.mubr.bf16.mxu1 %v5958_v2  ;;  %v4902_v56 = vcombine.low %v1238_v44, %v1248_v48 }
  0x90   : > { %4867 = vmatmul.mubr.msk.bf16.gmra.mrb[56].mxu0 %vm587_vm0, %v5868_v55  ;;  %4883 = vmatmul.mubr.msk.bf16.gmra.mrb[56].mxu1 %vm587_vm0, %v5868_v55  ;;  %v5887_v55 = vld [vmem:[%s7163_s1 + $0x14c] ss:$16 sps:$4 sm:$0xff]  }
  0x91   : > { %818 = vmatprep.mubr.bf16.mxu0 %v5958_v2  ;;  %1011 = vmatprep.mubr.bf16.mxu1 %v5958_v2 }
  0x98   : > { %4868 = vmatmul.mubr.msk.bf16.gmra.mrb[60].mxu0 %vm587_vm0, %v5869_v7  ;;  %4884 = vmatmul.mubr.msk.bf16.gmra.mrb[60].mxu1 %vm587_vm0, %v5869_v7  ;;  %v5890_v7 = vld [vmem:[%s7163_s1 + $0x164] ss:$16 sps:$4 sm:$0xff]  }
  0x99   : > { %1810 = vmatprep.mubr.bf16.mxu0 %v5958_v2  ;;  %2003 = vmatprep.mubr.bf16.mxu1 %v5958_v2 }
  0xa0   : > { %4933 = vmatmul.mubr.msk.bf16.vlgmr.msra.gmra.mrb[0].mxu0 %vm587_vm0, %v4901_v30  ;;  %4949 = vmatmul.mubr.msk.bf16.vlgmr.msra.gmra.mrb[0].mxu1 %vm587_vm0, %v4901_v30  ;;  %v1164_v30 = vld [vmem:[%s6113_s21 + $0x38] sm:$0x1] }
  0xa1   : > { %2953 = vmatpush1.bf16.msra.mxu0 %v5870_v28  ;;  %3146 = vmatpush1.bf16.msra.mxu1 %v5873_v29  ;;  %v1313_v28 = vrot.slane %v1311_v17, 4  ;;  %v1166_v29 = vld [vmem:[%s6113_s21 + $0x40] sm:$0xf]  ;;  %v1317_v39 = vshll.u32 %v1164_v30, 16 }
  0xa2   : > { %1820 = vmatprep.mubr.bf16.mxu0 %v5958_v2  ;;  %2013 = vmatprep.mubr.bf16.mxu1 %v5958_v2  ;;  %v1331_v34 = vshll.u32 %v1166_v29, 16  ;;  %v1335_v35 = vshrl.u32 %v1166_v29, 16 }
  0xa3   : > { %2954 = vmatprep.subr.bf16.mxu0 %v5878_v42  ;;  %3147 = vmatprep.subr.bf16.mxu1 %v5881_v43  ;;  %v1314_v38 = vor.u32 %v1313_v28, %v1309_v27  ;;  %v4904_v42 = vcombine.low %v1286_v33, %v1296_v36  ;;  %v1167_v43 = vld [vmem:[%s6113_s21 + $0x44] sm:$0x1]  ;;  %v1319_v48 = vrot.slane %v1317_v39, 5  ;;  %v1173_v28 = vld [vmem:[%s6113_s21 + $0x5c] sm:$0x1] }
  0xa4   : > { %v1333_v44 = vrot.slane %v1331_v34, 5  ;;  %v1337_v45 = vrot.slane %v1335_v35, 4  ;;  %v1376_v35 = vor.u32 %v1375_v25, %v1372_v23  ;;  %v1389_v37 = vshll.u32 %v1173_v28, 16  ;;  %v1183_v25 = vld [vmem:[%s6113_s21 + $0x84] sm:$0xf] }
  0xa5   : > { %2955 = vmatpush1.bf16.msra.mxu0 %v5876_v52  ;;  %3148 = vmatpush1.bf16.msra.mxu1 %v5879_v53  ;;  %v1315_v47 = vrot.slane %v1314_v38, 4  ;;  %v1341_v52 = vshll.u32 %v1167_v43, 16 }
  0xa6   : > { %2956 = vmatprep.subr.bf16.mxu0 %v5884_v54  ;;  %3149 = vmatprep.subr.bf16.mxu1 %v5887_v55  ;;  %v1338_v53 = vor.u32 %v1337_v45, %v1333_v44  ;;  %v1346_v54 = vshrl.u32 %v1168_v49, 16  ;;  %v1349_v55 = vshll.u32 %v1168_v49, 16  ;;  %v1334_v9 = vsel %vm6257_vm3, %v1329_v60, %v1333_v44  ;;  %v1177_v44 = vld [vmem:[%s6113_s21 + $0x6c] sm:$0xf]  ;;  %v1178_v45 = vld [vmem:[%s6113_s21 + $0x70] sm:$0xf] }
  0xa7   : > { %v1320_v57 = vsel %vm6257_vm3, %v1315_v47, %v1319_v48  ;;  %v1343_v61 = vrot.slane %v1341_v52, 5  ;;  %v1391_v48 = vrot.slane %v1389_v37, 5  ;;  %v1418_v52 = vshrl.u32 %v1177_v44, 16  ;;  %v1187_v37 = vld [vmem:[%s6113_s21 + $0x94] sm:$0xf] }
  0xa8   : > { %4934 = vmatmul.mubr.msk.bf16.gmra.mrb[4].mxu0 %vm587_vm0, %v4902_v56  ;;  %4950 = vmatmul.mubr.msk.bf16.gmra.mrb[4].mxu1 %vm587_vm0, %v4902_v56  ;;  %v1310_v56 = vsel %vm6257_vm3, %v1305_v46, %v1309_v27  ;;  %v1339_v63 = vrot.slane %v1338_v53, 4  ;;  %v1348_v1 = vrot.slane %v1346_v54, 4  ;;  %v1351_v3 = vrot.slane %v1349_v55, 5 }
  0xa9   : > { %1830 = vmatprep.mubr.bf16.mxu0 %v5958_v2  ;;  %2023 = vmatprep.mubr.bf16.mxu1 %v5958_v2  ;;  %v4905_v62 = vcombine.low %v1310_v56, %v1320_v57  ;;  %v1377_v46 = vrot.slane %v1376_v35, 4  ;;  %v1421_v53 = vshll.u32 %v1177_v44, 16  ;;  %v1427_v54 = vshll.u32 %v1178_v45, 16 }
  0xaa   : > { %2957 = vmatpush1.bf16.msra.mxu0 %v5882_v4  ;;  %3150 = vmatpush1.bf16.msra.mxu1 %v5885_v5  ;;  %v1357_v4 = vrot.slane %v1355_v58, 5  ;;  %v1361_v5 = vrot.slane %v1359_v59, 4  ;;  %v1344_v10 = vsel %vm6257_vm3, %v1339_v63, %v1343_v61  ;;  %v1352_v11 = vor.u32 %v1351_v3, %v1348_v1  ;;  %v1179_v3 = vld [vmem:[%s6113_s21 + $0x74] sm:$0x1] }
  0xab   : > { %2958 = vmatprep.subr.bf16.mxu0 %v5890_v7  ;;  %3151 = vmatprep.subr.bf16.mxu1 %v5893_v8  ;;  %v1172_v7 = vld [vmem:[%s6113_s21 + $0x58] sm:$0xf]  ;;  %v1365_v8 = vshll.u32 %v1170_v0, 16  ;;  %v1431_v55 = vshrl.u32 %v1178_v45, 16  ;;  %v1420_v61 = vrot.slane %v1418_v52, 4  ;;  %v1429_v63 = vrot.slane %v1427_v54, 5 }
  0xac   : > { %v1362_v14 = vor.u32 %v1361_v5, %v1357_v4  ;;  %v1379_v16 = vshll.u32 %v1172_v7, 16  ;;  %v1383_v17 = vshrl.u32 %v1172_v7, 16  ;;  %v1353_v21 = vrot.slane %v1352_v11, 4  ;;  %v1181_v5 = vld [vmem:[%s6113_s21 + $0x7c] sm:$0xf] }
  0xad   : > { %v1367_v22 = vrot.slane %v1365_v8, 5  ;;  %v1433_v0 = vrot.slane %v1431_v55, 4  ;;  %v1455_v15 = vshrl.u32 %v1181_v5, 16 }
  0xae   : > { %2959 = vmatpush1.bf16.msra.mxu0 %v5888_v18  ;;  %3152 = vmatpush1.bf16.msra.mxu1 %v5891_v19  ;;  %v1174_v18 = vld [vmem:[%s6113_s21 + $0x60] sm:$0xf]  ;;  %v1175_v19 = vld [vmem:[%s6113_s21 + $0x64] sm:$0xf]  ;;  %v1363_v24 = vrot.slane %v1362_v14, 4  ;;  %v1381_v26 = vrot.slane %v1379_v16, 5  ;;  %v1358_v33 = vsel %vm6257_vm3, %v1353_v21, %v1357_v4 }
  0xaf   : > { %v1385_v27 = vrot.slane %v1383_v17, 4  ;;  %v1394_v29 = vshrl.u32 %v1174_v18, 16  ;;  %v1397_v30 = vshll.u32 %v1174_v18, 16  ;;  %v1403_v31 = vshll.u32 %v1175_v19, 16  ;;  %v1180_v4 = vld [vmem:[%s6113_s21 + $0x78] sm:$0xf] }
  0xb0   : > { %4935 = vmatmul.mubr.msk.bf16.gmra.mrb[8].mxu0 %vm587_vm0, %v4903_v20  ;;  %4951 = vmatmul.mubr.msk.bf16.gmra.mrb[8].mxu1 %vm587_vm0, %v4903_v20  ;;  %v4906_v20 = vcombine.low %v1334_v9, %v1344_v10  ;;  %v1407_v32 = vshrl.u32 %v1175_v19, 16  ;;  %v1368_v34 = vsel %vm6257_vm3, %v1363_v24, %v1367_v22  ;;  %v1382_v56 = vsel %vm6257_vm3, %v1377_v46, %v1381_v26  ;;  %v1182_v24 = vld [vmem:[%s6113_s21 + $0x80] sm:$0x1]  ;;  %v1185_v46 = vld [vmem:[%s6113_s21 + $0x8c] sm:$0x1] }
  0xb1   : > { %1840 = vmatprep.mubr.bf16.mxu0 %v5958_v2  ;;  %2033 = vmatprep.mubr.bf16.mxu1 %v5958_v2  ;;  %v1386_v36 = vor.u32 %v1385_v27, %v1381_v26  ;;  %v1396_v38 = vrot.slane %v1394_v29, 4  ;;  %v1399_v39 = vrot.slane %v1397_v30, 5  ;;  %v1405_v40 = vrot.slane %v1403_v31, 5  ;;  %v1184_v26 = vld [vmem:[%s6113_s21 + $0x88] sm:$0xf] }
  0xb2   : > { %v1409_v41 = vrot.slane %v1407_v32, 4  ;;  %v4907_v43 = vcombine.low %v1358_v33, %v1368_v34  ;;  %v1434_v9 = vor.u32 %v1433_v0, %v1429_v63  ;;  %v1437_v10 = vshll.u32 %v1179_v3, 16 }
  0xb3   : > { %v1387_v47 = vrot.slane %v1386_v36, 4  ;;  %v1400_v49 = vor.u32 %v1399_v39, %v1396_v38  ;;  %v1442_v11 = vshrl.u32 %v1180_v4, 16  ;;  %v1445_v13 = vshll.u32 %v1180_v4, 16  ;;  %v1186_v36 = vld [vmem:[%s6113_s21 + $0x90] sm:$0xf] }
  0xb4   : > { %v1410_v50 = vor.u32 %v1409_v41, %v1405_v40  ;;  %v1451_v14 = vshll.u32 %v1181_v5, 16  ;;  %v1435_v18 = vrot.slane %v1434_v9, 4  ;;  %v1439_v19 = vrot.slane %v1437_v10, 5 }
  0xb5   : > { %v1392_v57 = vsel %vm6257_vm3, %v1387_v47, %v1391_v48  ;;  %v1401_v58 = vrot.slane %v1400_v49, 4  ;;  %v1447_v21 = vrot.slane %v1445_v13, 5  ;;  %v1457_v23 = vrot.slane %v1455_v15, 4 }
  0xb6   : > { %v1411_v59 = vrot.slane %v1410_v50, 4  ;;  %v4908_v1 = vcombine.low %v1382_v56, %v1392_v57  ;;  %v1453_v22 = vrot.slane %v1451_v14, 5  ;;  %v1440_v28 = vsel %vm6257_vm3, %v1435_v18, %v1439_v19 }
  0xb7   : > { %v1406_v6 = vsel %vm6257_vm3, %v1401_v58, %v1405_v40  ;;  %v1461_v31 = vshll.u32 %v1182_v24, 16  ;;  %v1466_v32 = vshrl.u32 %v1183_v25, 16  ;;  %v1469_v33 = vshll.u32 %v1183_v25, 16  ;;  %v1193_v24 = vld [vmem:[%s6113_s21 + $0xac] sm:$0xf] }
  0xb8   : > { %4936 = vmatmul.mubr.msk.bf16.gmra.mrb[12].mxu0 %vm587_vm0, %v4904_v42  ;;  %4952 = vmatmul.mubr.msk.bf16.gmra.mrb[12].mxu1 %vm587_vm0, %v4904_v42  ;;  %v1176_v42 = vld [vmem:[%s6113_s21 + $0x68] sm:$0x1]  ;;  %v1458_v30 = vor.u32 %v1457_v23, %v1453_v22  ;;  %v1475_v34 = vshll.u32 %v1184_v26, 16  ;;  %v1479_v35 = vshrl.u32 %v1184_v26, 16  ;;  %v1490_v47 = vshrl.u32 %v1186_v36, 16 }
  0xb9   : > { %1850 = vmatprep.mubr.bf16.mxu0 %v5958_v2  ;;  %2043 = vmatprep.mubr.bf16.mxu1 %v5958_v2  ;;  %v1413_v51 = vshll.u32 %v1176_v42, 16  ;;  %v1463_v41 = vrot.slane %v1461_v31, 5  ;;  %v1468_v42 = vrot.slane %v1466_v32, 4  ;;  %v1493_v48 = vshll.u32 %v1186_v36, 16  ;;  %v1192_v23 = vld [vmem:[%s6113_s21 + $0xa8] sm:$0xf] }
  0xba   : > { %v1459_v40 = vrot.slane %v1458_v30, 4  ;;  %v1477_v44 = vrot.slane %v1475_v34, 5  ;;  %v1481_v45 = vrot.slane %v1479_v35, 4  ;;  %v1499_v49 = vshll.u32 %v1187_v37, 16 }
  0xbb   : > { %v1415_v60 = vrot.slane %v1413_v51, 5  ;;  %v1503_v50 = vshrl.u32 %v1187_v37, 16  ;;  %v1485_v55 = vshll.u32 %v1185_v46, 16  ;;  %v1492_v56 = vrot.slane %v1490_v47, 4 }
  0xbc   : > { %v1464_v52 = vsel %vm6257_vm3, %v1459_v40, %v1463_v41  ;;  %v1482_v54 = vor.u32 %v1481_v45, %v1477_v44  ;;  %v1495_v57 = vrot.slane %v1493_v48, 5  ;;  %v1501_v58 = vrot.slane %v1499_v49, 5 }
  0xbd   : > { %v1416_v7 = vsel %vm6257_vm3, %v1411_v59, %v1415_v60  ;;  %v1505_v59 = vrot.slane %v1503_v50, 4  ;;  %v1188_v60 = vld [vmem:[%s6113_s21 + $0x98] sm:$0x1]  ;;  %v1487_v3 = vrot.slane %v1485_v55, 5  ;;  %v1538_v30 = vshrl.u32 %v1192_v23, 16 }
  0xbe   : > { %v4909_v16 = vcombine.low %v1406_v6, %v1416_v7  ;;  %v1496_v4 = vor.u32 %v1495_v57, %v1492_v56  ;;  %v1509_v6 = vshll.u32 %v1188_v60, 16  ;;  %v1541_v31 = vshll.u32 %v1192_v23, 16 }
  0xbf   : > { %v1506_v5 = vor.u32 %v1505_v59, %v1501_v58  ;;  %v1547_v32 = vshll.u32 %v1193_v24, 16 }
  0xc0   : > { %4937 = vmatmul.mubr.msk.bf16.gmra.mrb[16].mxu0 %vm587_vm0, %v4905_v62  ;;  %4953 = vmatmul.mubr.msk.bf16.gmra.mrb[16].mxu1 %vm587_vm0, %v4905_v62  ;;  %v1423_v62 = vrot.slane %v1421_v53, 5  ;;  %v1497_v14 = vrot.slane %v1496_v4, 4 }
  0xc1   : > { %1860 = vmatprep.mubr.bf16.mxu0 %v5958_v2  ;;  %2053 = vmatprep.mubr.bf16.mxu1 %v5958_v2  ;;  %v1507_v15 = vrot.slane %v1506_v5, 4  ;;  %v1549_v40 = vrot.slane %v1547_v32, 5 }
  0xc2   : > { %v1424_v8 = vor.u32 %v1423_v62, %v1420_v61  ;;  %v1189_v62 = vld [vmem:[%s6113_s21 + $0x9c] sm:$0xf]  ;;  %v1502_v25 = vsel %vm6257_vm3, %v1497_v14, %v1501_v58  ;;  %v2548_v14 = vld [vmem:[%s6113_s21] sm:$0xe] }
  0xc3   : > { %v1514_v7 = vshrl.u32 %v1189_v62, 16 }
  0xc4   : > { %v1425_v17 = vrot.slane %v1424_v8, 4  ;;  %v1517_v8 = vshll.u32 %v1189_v62, 16  ;;  %v1197_v62 = vld [vmem:[%s6113_s21 + $0xbc] sm:$0x1] }
  0xc5   : > { %v1581_v4 = vshll.u32 %v1197_v62, 16 }
  0xc6   : > { %v1430_v27 = vsel %vm6257_vm3, %v1425_v17, %v1429_v63  ;;  %v1190_v63 = vld [vmem:[%s6113_s21 + $0xa0] sm:$0xf]  ;;  %v1516_v17 = vrot.slane %v1514_v7, 4  ;;  %v1519_v18 = vrot.slane %v1517_v8, 5 }
  0xc7   : > { %v4910_v38 = vcombine.low %v1430_v27, %v1440_v28  ;;  %v1523_v9 = vshll.u32 %v1190_v63, 16  ;;  %v1527_v10 = vshrl.u32 %v1190_v63, 16  ;;  %v1583_v8 = vrot.slane %v1581_v4, 5 }
  0xc8   : > { %4938 = vmatmul.mubr.msk.bf16.gmra.mrb[20].mxu0 %vm587_vm0, %v4906_v20  ;;  %4954 = vmatmul.mubr.msk.bf16.gmra.mrb[20].mxu1 %vm587_vm0, %v4906_v20  ;;  %v1444_v20 = vrot.slane %v1442_v11, 4  ;;  %v1520_v27 = vor.u32 %v1519_v18, %v1516_v17  ;;  %v4965_v17 = vrot.slane %v2548_v14, 9 }
  0xc9   : > { %1870 = vmatprep.mubr.bf16.mxu0 %v5958_v2  ;;  %2063 = vmatprep.mubr.bf16.mxu1 %v5958_v2  ;;  %v1525_v19 = vrot.slane %v1523_v9, 5  ;;  %v2549_v9 = vld [vmem:[%s6113_s21 + $0x4] sm:$0xf] }
  0xca   : > { %v1448_v29 = vor.u32 %v1447_v21, %v1444_v20  ;;  %v1529_v20 = vrot.slane %v1527_v10, 4  ;;  %v1521_v35 = vrot.slane %v1520_v27, 4 }
  0xcc   : > { %v1449_v39 = vrot.slane %v1448_v29, 4  ;;  %v1530_v28 = vor.u32 %v1529_v20, %v1525_v19  ;;  %v1526_v45 = vsel %vm6257_vm3, %v1521_v35, %v1525_v19  ;;  %v2556_v35 = vld [vmem:[%s6113_s21 + $0x20] sm:$0x1] }
  0xce   : > { %v1454_v51 = vsel %vm6257_vm3, %v1449_v39, %v1453_v22  ;;  %v1191_v22 = vld [vmem:[%s6113_s21 + $0xa4] sm:$0x1]  ;;  %v1531_v36 = vrot.slane %v1530_v28, 4  ;;  %v1543_v39 = vrot.slane %v1541_v31, 5 }
  0xcf   : > { %v4911_v61 = vcombine.low %v1454_v51, %v1464_v52  ;;  %v1533_v29 = vshll.u32 %v1191_v22, 16 }
  0xd0   : > { %4939 = vmatmul.mubr.msk.bf16.gmra.mrb[24].mxu0 %vm587_vm0, %v4907_v43  ;;  %4955 = vmatmul.mubr.msk.bf16.gmra.mrb[24].mxu1 %vm587_vm0, %v4907_v43  ;;  %v1471_v43 = vrot.slane %v1469_v33, 5  ;;  %v1551_v33 = vshrl.u32 %v1193_v24, 16  ;;  %v2551_v24 = vld [vmem:[%s6113_s21 + $0xc] sm:$0xe] }
  0xd1   : > { %1880 = vmatprep.mubr.bf16.mxu0 %v5958_v2  ;;  %2073 = vmatprep.mubr.bf16.mxu1 %v5958_v2  ;;  %v1535_v37 = vrot.slane %v1533_v29, 5  ;;  %v4966_v27 = vrot.slane %v2551_v24, 9 }
  0xd2   : > { %v1472_v53 = vor.u32 %v1471_v43, %v1468_v42  ;;  %v1553_v41 = vrot.slane %v1551_v33, 4  ;;  %v1194_v42 = vld [vmem:[%s6113_s21 + $0xb0] sm:$0x1]  ;;  %v1195_v43 = vld [vmem:[%s6113_s21 + $0xb4] sm:$0xf] }
  0xd3   : > { %v1536_v46 = vsel %vm6257_vm3, %v1531_v36, %v1535_v37  ;;  %v1557_v49 = vshll.u32 %v1194_v42, 16  ;;  %v1562_v50 = vshrl.u32 %v1195_v43, 16  ;;  %v1565_v51 = vshll.u32 %v1195_v43, 16 }
  0xd4   : > { %v1473_v0 = vrot.slane %v1472_v53, 4  ;;  %v1554_v48 = vor.u32 %v1553_v41, %v1549_v40 }
  0xd5   : > { %v1559_v57 = vrot.slane %v1557_v49, 5  ;;  %v1564_v58 = vrot.slane %v1562_v50, 4  ;;  %v1567_v59 = vrot.slane %v1565_v51, 5  ;;  %v2561_v50 = vld [vmem:[%s6113_s21 + $0x34] sm:$0xf] }
  0xd6   : > { %v1478_v11 = vsel %vm6257_vm3, %v1473_v0, %v1477_v44  ;;  %v1196_v44 = vld [vmem:[%s6113_s21 + $0xb8] sm:$0xf]  ;;  %v1555_v56 = vrot.slane %v1554_v48, 4 }
  0xd7   : > { %v1571_v52 = vshll.u32 %v1196_v44, 16  ;;  %v1575_v53 = vshrl.u32 %v1196_v44, 16  ;;  %v2557_v44 = vld [vmem:[%s6113_s21 + $0x24] sm:$0xe] }
  0xd8   : > { %4940 = vmatmul.mubr.msk.bf16.gmra.mrb[28].mxu0 %vm587_vm0, %v4908_v1  ;;  %4956 = vmatmul.mubr.msk.bf16.gmra.mrb[28].mxu1 %vm587_vm0, %v4908_v1  ;;  %v1483_v1 = vrot.slane %v1482_v54, 4  ;;  %v4914_v54 = vcombine.low %v1526_v45, %v1536_v46  ;;  %v1560_v0 = vsel %vm6257_vm3, %v1555_v56, %v1559_v57  ;;  %v2559_v45 = vld [vmem:[%s6113_s21 + $0x2c] sm:$0x1] }
  0xd9   : > { %1890 = vmatprep.mubr.bf16.mxu0 %v5958_v2  ;;  %2083 = vmatprep.mubr.bf16.mxu1 %v5958_v2  ;;  %v1573_v60 = vrot.slane %v1571_v52, 5  ;;  %v2673_v49 = vrot.slane %v2559_v45, 5 }
  0xda   : > { %v1488_v13 = vsel %vm6257_vm3, %v1483_v1, %v1487_v3  ;;  %v1568_v1 = vor.u32 %v1567_v59, %v1564_v58 }
  0xdb   : > { %v4912_v21 = vcombine.low %v1478_v11, %v1488_v13  ;;  %v2649_v13 = vrot.slane %v2549_v9, 5 }
  0xdd   : > { %v2651_v18 = vrot.slane %v2649_v13, 4  ;;  %v2650_v12 = vsel %vm6480_vm6, %v4965_v17, %v2649_v13  ;;  %v2568_v13 = vld [vmem:[%s6113_s21 + $0x50] sm:$0x1] }
  0xde   : > { %v2694_v17 = vrot.slane %v2568_v13, 5 }
  0xe0   : > { %4941 = vmatmul.mubr.msk.bf16.gmra.mrb[32].mxu0 %vm587_vm0, %v4909_v16  ;;  %4957 = vmatmul.mubr.msk.bf16.gmra.mrb[32].mxu1 %vm587_vm0, %v4909_v16  ;;  %v1511_v16 = vrot.slane %v1509_v6, 5  ;;  %v1569_v6 = vrot.slane %v1568_v1, 4  ;;  %v2565_v1 = vld [vmem:[%s6113_s21 + $0x44] sm:$0x1] }
  0xe1   : > { %1900 = vmatprep.mubr.bf16.mxu0 %v5958_v2  ;;  %2093 = vmatprep.mubr.bf16.mxu1 %v5958_v2 }
  0xe2   : > { %v1512_v26 = vsel %vm6257_vm3, %v1507_v15, %v1511_v16  ;;  %v1574_v10 = vsel %vm6257_vm3, %v1569_v6, %v1573_v60  ;;  %v2550_v15 = vld [vmem:[%s6113_s21 + $0x8] sm:$0x1]  ;;  %v2687_v6 = vrot.slane %v2565_v1, 5 }
  0xe3   : > { %v4913_v34 = vcombine.low %v1502_v25, %v1512_v26  ;;  %v2652_v19 = vrot.slane %v2550_v15, 5  ;;  %v2553_v25 = vld [vmem:[%s6113_s21 + $0x14] sm:$0x1] }
  0xe4   : > { %v2659_v29 = vrot.slane %v2553_v25, 5 }
  0xe5   : > { %v2653_v22 = vsel %vm6480_vm6, %v2651_v18, %v2652_v19  ;;  %v2570_v18 = vld [vmem:[%s6113_s21 + $0x58] sm:$0xf] }
  0xe6   : > { %v4997_v26 = vcombine.low %v2650_v12, %v2653_v22  ;;  %v2698_v12 = vrot.slane %v2570_v18, 5  ;;  %v2569_v22 = vld [vmem:[%s6113_s21 + $0x54] sm:$0xe] }
  0xe7   : > { %v4972_v25 = vrot.slane %v2569_v22, 9 }
  0xe8   : > { %4942 = vmatmul.mubr.msk.bf16.gmra.mrb[36].mxu0 %vm587_vm0, %v4910_v38  ;;  %4958 = vmatmul.mubr.msk.bf16.gmra.mrb[36].mxu1 %vm587_vm0, %v4910_v38  ;;  %v1540_v38 = vrot.slane %v1538_v30, 4  ;;  %v2555_v30 = vld [vmem:[%s6113_s21 + $0x1c] sm:$0xf] }
  0xe9   : > { %1910 = vmatprep.mubr.bf16.mxu0 %v5958_v2  ;;  %2103 = vmatprep.mubr.bf16.mxu1 %v5958_v2  ;;  %v2663_v33 = vrot.slane %v2555_v30, 5 }
  0xea   : > { %v1544_v47 = vor.u32 %v1543_v39, %v1540_v38  ;;  %v2666_v39 = vrot.slane %v2556_v35, 5 }
  0xeb   : > { %v2665_v38 = vrot.slane %v2663_v33, 4 }
  0xec   : > { %v1545_v55 = vrot.slane %v1544_v47, 4  ;;  %v4968_v47 = vrot.slane %v2557_v44, 9 }
  0xed   : > { %v2667_v42 = vsel %vm6480_vm6, %v2665_v38, %v2666_v39  ;;  %v2576_v38 = vld [vmem:[%s6113_s21 + $0x70] sm:$0xf] }
  0xee   : > { %v1550_v63 = vsel %vm6257_vm3, %v1545_v55, %v1549_v40  ;;  %v2558_v40 = vld [vmem:[%s6113_s21 + $0x28] sm:$0xf]  ;;  %v2562_v55 = vld [vmem:[%s6113_s21 + $0x38] sm:$0x1] }
  0xef   : > { %v4915_v5 = vcombine.low %v1550_v63, %v1560_v0  ;;  %v2670_v43 = vrot.slane %v2558_v40, 5  ;;  %v2680_v59 = vrot.slane %v2562_v55, 5  ;;  %v2563_v0 = vld [vmem:[%s6113_s21 + $0x3c] sm:$0xe] }
  0xf0   : > { %4943 = vmatmul.mubr.msk.bf16.gmra.mrb[40].mxu0 %vm587_vm0, %v4911_v61  ;;  %4959 = vmatmul.mubr.msk.bf16.gmra.mrb[40].mxu1 %vm587_vm0, %v4911_v61  ;;  %v1577_v61 = vrot.slane %v1575_v53, 4  ;;  %v2677_v53 = vrot.slane %v2561_v50, 5  ;;  %v4970_v4 = vrot.slane %v2563_v0, 9 }
  0xf1   : > { %1920 = vmatprep.mubr.bf16.mxu0 %v5958_v2  ;;  %2113 = vmatprep.mubr.bf16.mxu1 %v5958_v2  ;;  %v2672_v48 = vrot.slane %v2670_v43, 4  ;;  %v2671_v51 = vsel %vm6480_vm6, %v4968_v47, %v2670_v43  ;;  %v2577_v43 = vld [vmem:[%s6113_s21 + $0x74] sm:$0x1] }
  0xf2   : > { %v1578_v3 = vor.u32 %v1577_v61, %v1573_v60  ;;  %v2679_v58 = vrot.slane %v2677_v53, 4  ;;  %v2564_v60 = vld [vmem:[%s6113_s21 + $0x40] sm:$0xf]  ;;  %v2715_v47 = vrot.slane %v2577_v43, 5 }
  0xf3   : > { %v2674_v52 = vsel %vm6480_vm6, %v2672_v48, %v2673_v49  ;;  %v2684_v63 = vrot.slane %v2564_v60, 5  ;;  %v2579_v48 = vld [vmem:[%s6113_s21 + $0x7c] sm:$0xf] }
  0xf4   : > { %v1579_v7 = vrot.slane %v1578_v3, 4  ;;  %v5000_v56 = vcombine.low %v2671_v51, %v2674_v52  ;;  %v2681_v62 = vsel %vm6480_vm6, %v2679_v58, %v2680_v59  ;;  %v2719_v51 = vrot.slane %v2579_v48, 5  ;;  %v2578_v52 = vld [vmem:[%s6113_s21 + $0x78] sm:$0xe]  ;;  %v2582_v58 = vld [vmem:[%s6113_s21 + $0x88] sm:$0xf] }
  0xf5   : > { %v4975_v55 = vrot.slane %v2578_v52, 9 }
  0xf6   : > { %v1584_v11 = vsel %vm6257_vm3, %v1579_v7, %v1583_v8  ;;  %v2567_v7 = vld [vmem:[%s6113_s21 + $0x4c] sm:$0xf]  ;;  %v2685_v8 = vsel %vm6480_vm6, %v4970_v4, %v2684_v63 }
  0xf7   : > { %v4916_v16 = vcombine.low %v1574_v10, %v1584_v11  ;;  %v2691_v10 = vrot.slane %v2567_v7, 5  ;;  %v2566_v11 = vld [vmem:[%s6113_s21 + $0x48] sm:$0xe]  ;;  %v2720_v59 = vsel %vm6480_vm6, %v4975_v55, %v2719_v51 }
  0xf8   : > { %4944 = vmatmul.mubr.msk.bf16.gmra.mrb[44].mxu0 %vm587_vm0, %v4912_v21  ;;  %4960 = vmatmul.mubr.msk.bf16.gmra.mrb[44].mxu1 %vm587_vm0, %v4912_v21  ;;  %v2552_v21 = vld [vmem:[%s6113_s21 + $0x10] sm:$0xf]  ;;  %v4971_v15 = vrot.slane %v2566_v11, 9 }
  0xf9   : > { %1930 = vmatprep.mubr.bf16.mxu0 %v5958_v2  ;;  %2123 = vmatprep.mubr.bf16.mxu1 %v5958_v2  ;;  %v2656_v23 = vrot.slane %v2552_v21, 5 }
  0xfa   : > { %v2692_v19 = vsel %vm6480_vm6, %v4971_v15, %v2691_v10 }
  0xfb   : > { %v2658_v28 = vrot.slane %v2656_v23, 4  ;;  %v2657_v31 = vsel %vm6480_vm6, %v4966_v27, %v2656_v23  ;;  %v2571_v23 = vld [vmem:[%s6113_s21 + $0x5c] sm:$0x1] }
  0xfc   : > { %v2701_v27 = vrot.slane %v2571_v23, 5 }
  0xfd   : > { %v2660_v32 = vsel %vm6480_vm6, %v2658_v28, %v2659_v29  ;;  %v2573_v28 = vld [vmem:[%s6113_s21 + $0x64] sm:$0xf]  ;;  %v2699_v29 = vsel %vm6480_vm6, %v4972_v25, %v2698_v12 }
  0xfe   : > { %v4998_v36 = vcombine.low %v2657_v31, %v2660_v32  ;;  %v2705_v31 = vrot.slane %v2573_v28, 5  ;;  %v2572_v32 = vld [vmem:[%s6113_s21 + $0x60] sm:$0xe] }
  0xff   : > { %v4973_v35 = vrot.slane %v2572_v32, 9 }
 0x100   : > { %4945 = vmatmul.mubr.msk.bf16.gmra.mrb[48].mxu0 %vm587_vm0, %v4913_v34  ;;  %4961 = vmatmul.mubr.msk.bf16.gmra.mrb[48].mxu1 %vm587_vm0, %v4913_v34  ;;  %v2554_v34 = vld [vmem:[%s6113_s21 + $0x18] sm:$0xe] }
 0x101   : > { %1940 = vmatprep.mubr.bf16.mxu0 %v5958_v2  ;;  %2133 = vmatprep.mubr.bf16.mxu1 %v5958_v2  ;;  %v4967_v37 = vrot.slane %v2554_v34, 9  ;;  %v2706_v39 = vsel %vm6480_vm6, %v4973_v35, %v2705_v31 }
 0x103   : > { %v2664_v41 = vsel %vm6480_vm6, %v4967_v37, %v2663_v33  ;;  %v2574_v33 = vld [vmem:[%s6113_s21 + $0x68] sm:$0x1] }
 0x104   : > { %v4999_v46 = vcombine.low %v2664_v41, %v2667_v42  ;;  %v2708_v37 = vrot.slane %v2574_v33, 5  ;;  %v2712_v41 = vrot.slane %v2576_v38, 5  ;;  %v2575_v42 = vld [vmem:[%s6113_s21 + $0x6c] sm:$0xe] }
 0x105   : > { %v4974_v45 = vrot.slane %v2575_v42, 9 }
 0x107   : > { %v2713_v49 = vsel %vm6480_vm6, %v4974_v45, %v2712_v41 }
 0x108   : > { %4946 = vmatmul.mubr.msk.bf16.gmra.mrb[52].mxu0 %vm587_vm0, %v4914_v54  ;;  %4962 = vmatmul.mubr.msk.bf16.gmra.mrb[52].mxu1 %vm587_vm0, %v4914_v54  ;;  %v2560_v54 = vld [vmem:[%s6113_s21 + $0x30] sm:$0xe] }
 0x109   : > { %1950 = vmatprep.mubr.bf16.mxu0 %v5958_v2  ;;  %2143 = vmatprep.mubr.bf16.mxu1 %v5958_v2  ;;  %v4969_v57 = vrot.slane %v2560_v54, 9 }
 0x10b   : > { %v2678_v61 = vsel %vm6480_vm6, %v4969_v57, %v2677_v53  ;;  %v2580_v53 = vld [vmem:[%s6113_s21 + $0x80] sm:$0x1] }
 0x10c   : > { %v5001_v3 = vcombine.low %v2678_v61, %v2681_v62  ;;  %v2722_v57 = vrot.slane %v2580_v53, 5  ;;  %v2726_v61 = vrot.slane %v2582_v58, 5  ;;  %v2581_v62 = vld [vmem:[%s6113_s21 + $0x84] sm:$0xe]  ;;  %v3850_v53 = vld [vmem:[%s7164_s2] sm:$0xf] }
 0x10d   : > { %v4976_v1 = vrot.slane %v2581_v62, 9 }
 0x110   : > { %4947 = vmatmul.mubr.msk.bf16.gmra.mrb[56].mxu0 %vm587_vm0, %v4915_v5  ;;  %4963 = vmatmul.mubr.msk.bf16.gmra.mrb[56].mxu1 %vm587_vm0, %v4915_v5  ;;  %v2686_v5 = vrot.slane %v2684_v63, 4  ;;  %v2583_v63 = vld [vmem:[%s6113_s21 + $0x8c] sm:$0x1] }
 0x111   : > { %1960 = vmatprep.mubr.bf16.mxu0 %v5958_v2  ;;  %2153 = vmatprep.mubr.bf16.mxu1 %v5958_v2  ;;  %v2729_v4 = vrot.slane %v2583_v63, 5 }
 0x112   : > { %v2688_v9 = vsel %vm6480_vm6, %v2686_v5, %v2687_v6  ;;  %v2585_v5 = vld [vmem:[%s6113_s21 + $0x94] sm:$0xf]  ;;  %v2727_v6 = vsel %vm6480_vm6, %v4976_v1, %v2726_v61 }
 0x113   : > { %v5002_v14 = vcombine.low %v2685_v8, %v2688_v9  ;;  %v2733_v8 = vrot.slane %v2585_v5, 5  ;;  %v2584_v9 = vld [vmem:[%s6113_s21 + $0x90] sm:$0xe] }
 0x114   : > { %v4977_v13 = vrot.slane %v2584_v9, 9  ;;  %v4129_v9 = vld [vmem:[%s7165_s3 + $0x8] sm:$0xff] }
 0x118   : > { %4948 = vmatmul.mubr.msk.bf16.gmra.mrb[60].mxu0 %vm587_vm0, %v4916_v16  ;;  %4964 = vmatmul.mubr.msk.bf16.gmra.mrb[60].mxu1 %vm587_vm0, %v4916_v16  ;;  %v2693_v16 = vrot.slane %v2691_v10, 4  ;;  %v2586_v10 = vld [vmem:[%s6113_s21 + $0x98] sm:$0x1] }
 0x119   : > { %2984 = vmatprep.mubr.bf16.mxu0 %v5958_v2  ;;  %3177 = vmatprep.mubr.bf16.mxu1 %v5958_v2  ;;  %v2736_v15 = vrot.slane %v2586_v10, 5 }
 0x11a   : > { %v2695_v21 = vsel %vm6480_vm6, %v2693_v16, %v2694_v17  ;;  %v2588_v16 = vld [vmem:[%s6113_s21 + $0xa0] sm:$0xf]  ;;  %v2734_v17 = vsel %vm6480_vm6, %v4977_v13, %v2733_v8 }
 0x11b   : > { %v5003_v24 = vcombine.low %v2692_v19, %v2695_v21  ;;  %v2740_v19 = vrot.slane %v2588_v16, 5  ;;  %v2587_v21 = vld [vmem:[%s6113_s21 + $0x9c] sm:$0xe] }
 0x11c   : > { %v4978_v23 = vrot.slane %v2587_v21, 9 }
 0x120   : > { %5029 = vmatmul.mubr.msk.bf16.vlgmr.msra.gmra.mrb[0].mxu0 %vm587_vm0, %v4997_v26  ;;  %5045 = vmatmul.mubr.msk.bf16.vlgmr.msra.gmra.mrb[0].mxu1 %vm587_vm0, %v4997_v26  ;;  %v2700_v26 = vrot.slane %v2698_v12, 4  ;;  %v2589_v12 = vld [vmem:[%s6113_s21 + $0xa4] sm:$0x1] }
 0x121   : > { %2994 = vmatprep.mubr.bf16.mxu0 %v5958_v2  ;;  %3187 = vmatprep.mubr.bf16.mxu1 %v5958_v2  ;;  %v2743_v25 = vrot.slane %v2589_v12, 5 }
 0x122   : > { %v2702_v30 = vsel %vm6480_vm6, %v2700_v26, %v2701_v27  ;;  %v2591_v26 = vld [vmem:[%s6113_s21 + $0xac] sm:$0xf]  ;;  %v2741_v27 = vsel %vm6480_vm6, %v4978_v23, %v2740_v19 }
 0x123   : > { %v5004_v34 = vcombine.low %v2699_v29, %v2702_v30  ;;  %v2747_v29 = vrot.slane %v2591_v26, 5  ;;  %v2590_v30 = vld [vmem:[%s6113_s21 + $0xa8] sm:$0xe] }
 0x124   : > { %v4979_v33 = vrot.slane %v2590_v30, 9 }
 0x128   : > { %5030 = vmatmul.mubr.msk.bf16.gmra.mrb[4].mxu0 %vm587_vm0, %v4998_v36  ;;  %5046 = vmatmul.mubr.msk.bf16.gmra.mrb[4].mxu1 %vm587_vm0, %v4998_v36  ;;  %v2707_v36 = vrot.slane %v2705_v31, 4  ;;  %v2592_v31 = vld [vmem:[%s6113_s21 + $0xb0] sm:$0x1] }
 0x129   : > { %3004 = vmatprep.mubr.bf16.mxu0 %v5958_v2  ;;  %3197 = vmatprep.mubr.bf16.mxu1 %v5958_v2  ;;  %v2750_v35 = vrot.slane %v2592_v31, 5 }
 0x12a   : > { %v2709_v40 = vsel %vm6480_vm6, %v2707_v36, %v2708_v37  ;;  %v2594_v36 = vld [vmem:[%s6113_s21 + $0xb8] sm:$0xf]  ;;  %v2748_v37 = vsel %vm6480_vm6, %v4979_v33, %v2747_v29 }
 0x12b   : > { %v5005_v44 = vcombine.low %v2706_v39, %v2709_v40  ;;  %v2754_v39 = vrot.slane %v2594_v36, 5  ;;  %v2593_v40 = vld [vmem:[%s6113_s21 + $0xb4] sm:$0xe] }
 0x12c   : > { %v4980_v43 = vrot.slane %v2593_v40, 9 }
 0x130   : > { %5031 = vmatmul.mubr.msk.bf16.gmra.mrb[8].mxu0 %vm587_vm0, %v4999_v46  ;;  %5047 = vmatmul.mubr.msk.bf16.gmra.mrb[8].mxu1 %vm587_vm0, %v4999_v46  ;;  %v2714_v46 = vrot.slane %v2712_v41, 4  ;;  %v2595_v41 = vld [vmem:[%s6113_s21 + $0xbc] sm:$0x1] }
 0x131   : > { %3014 = vmatprep.mubr.bf16.mxu0 %v5958_v2  ;;  %3207 = vmatprep.mubr.bf16.mxu1 %v5958_v2  ;;  %v2757_v45 = vrot.slane %v2595_v41, 5 }
 0x132   : > { %v2716_v50 = vsel %vm6480_vm6, %v2714_v46, %v2715_v47  ;;  %v2755_v46 = vsel %vm6480_vm6, %v4980_v43, %v2754_v39 }
 0x133   : > { %v5006_v54 = vcombine.low %v2713_v49, %v2716_v50  ;;  %v3852_v49 = vlaneseq }
 0x135   : > { %v3853_v50 = vshrl.u32 %v3852_v49, 7 }
 0x137   : > { %v3862_v52 = vsub.s32 2, %v3853_v50 }
 0x138   : > { %5032 = vmatmul.mubr.msk.bf16.gmra.mrb[12].mxu0 %vm587_vm0, %v5000_v56  ;;  %5048 = vmatmul.mubr.msk.bf16.gmra.mrb[12].mxu1 %vm587_vm0, %v5000_v56  ;;  %v2721_v56 = vrot.slane %v2719_v51, 4  ;;  %v3854_v51 = vsub.s32 0, %v3853_v50 }
 0x139   : > { %3024 = vmatprep.mubr.bf16.mxu0 %v5958_v2  ;;  %3217 = vmatprep.mubr.bf16.mxu1 %v5958_v2 }
 0x13a   : > { %v2723_v60 = vsel %vm6480_vm6, %v2721_v56, %v2722_v57  ;;  %v6662_v55 = vrot.slane %v3850_v53, %v3854_v51  ;;  %v6664_v56 = vrot.slane %v3850_v53, %v3862_v52 }
 0x13b   : > { %v5007_v0 = vcombine.low %v2720_v59, %v2723_v60 }
 0x140   : > { %5033 = vmatmul.mubr.msk.bf16.gmra.mrb[16].mxu0 %vm587_vm0, %v5001_v3  ;;  %5049 = vmatmul.mubr.msk.bf16.gmra.mrb[16].mxu1 %vm587_vm0, %v5001_v3  ;;  %v2728_v3 = vrot.slane %v2726_v61, 4 }
 0x141   : > { %3034 = vmatprep.mubr.bf16.mxu0 %v5958_v2  ;;  %3227 = vmatprep.mubr.bf16.mxu1 %v5958_v2 }
 0x142   : > { %v2730_v7 = vsel %vm6480_vm6, %v2728_v3, %v2729_v4 }
 0x143   : > { %v5008_v11 = vcombine.low %v2727_v6, %v2730_v7 }
 0x148   : > { %5034 = vmatmul.mubr.msk.bf16.gmra.mrb[20].mxu0 %vm587_vm0, %v5002_v14  ;;  %5050 = vmatmul.mubr.msk.bf16.gmra.mrb[20].mxu1 %vm587_vm0, %v5002_v14  ;;  %v2735_v14 = vrot.slane %v2733_v8, 4 }
 0x149   : > { %3044 = vmatprep.mubr.bf16.mxu0 %v5958_v2  ;;  %3237 = vmatprep.mubr.bf16.mxu1 %v5958_v2 }
 0x14a   : > { %v2737_v18 = vsel %vm6480_vm6, %v2735_v14, %v2736_v15 }
 0x14b   : > { %v5009_v22 = vcombine.low %v2734_v17, %v2737_v18 }
 0x150   : > { %5035 = vmatmul.mubr.msk.bf16.gmra.mrb[24].mxu0 %vm587_vm0, %v5003_v24  ;;  %5051 = vmatmul.mubr.msk.bf16.gmra.mrb[24].mxu1 %vm587_vm0, %v5003_v24  ;;  %v2742_v24 = vrot.slane %v2740_v19, 4 }
 0x151   : > { %3054 = vmatprep.mubr.bf16.mxu0 %v5958_v2  ;;  %3247 = vmatprep.mubr.bf16.mxu1 %v5958_v2 }
 0x152   : > { %v2744_v28 = vsel %vm6480_vm6, %v2742_v24, %v2743_v25 }
 0x153   : > { %v5010_v32 = vcombine.low %v2741_v27, %v2744_v28 }
 0x158   : > { %5036 = vmatmul.mubr.msk.bf16.gmra.mrb[28].mxu0 %vm587_vm0, %v5004_v34  ;;  %5052 = vmatmul.mubr.msk.bf16.gmra.mrb[28].mxu1 %vm587_vm0, %v5004_v34  ;;  %v2749_v34 = vrot.slane %v2747_v29, 4 }
 0x159   : > { %3064 = vmatprep.mubr.bf16.mxu0 %v5958_v2  ;;  %3257 = vmatprep.mubr.bf16.mxu1 %v5958_v2 }
 0x15a   : > { %v2751_v38 = vsel %vm6480_vm6, %v2749_v34, %v2750_v35 }
 0x15b   : > { %v5011_v42 = vcombine.low %v2748_v37, %v2751_v38 }
 0x160   : > { %5037 = vmatmul.mubr.msk.bf16.gmra.mrb[32].mxu0 %vm587_vm0, %v5005_v44  ;;  %5053 = vmatmul.mubr.msk.bf16.gmra.mrb[32].mxu1 %vm587_vm0, %v5005_v44  ;;  %v2756_v44 = vrot.slane %v2754_v39, 4 }
 0x161   : > { %3074 = vmatprep.mubr.bf16.mxu0 %v5958_v2  ;;  %3267 = vmatprep.mubr.bf16.mxu1 %v5958_v2 }
 0x162   : > { %v2758_v47 = vsel %vm6480_vm6, %v2756_v44, %v2757_v45 }
 0x163   : > { %v5012_v48 = vcombine.low %v2755_v46, %v2758_v47 }
 0x168   : > { %5038 = vmatmul.mubr.msk.bf16.gmra.mrb[36].mxu0 %vm587_vm0, %v5006_v54  ;;  %5054 = vmatmul.mubr.msk.bf16.gmra.mrb[36].mxu1 %vm587_vm0, %v5006_v54  ;;  %v3866_v54 = vsub.s32 3, %v3853_v50 }
 0x169   : > { %3084 = vmatprep.mubr.bf16.mxu0 %v5958_v2  ;;  %3277 = vmatprep.mubr.bf16.mxu1 %v5958_v2 }
 0x16a   : > { %v6668_v57 = vrot.slane %v3850_v53, %v3866_v54 }
 0x170   : > { %5039 = vmatmul.mubr.msk.bf16.gmra.mrb[40].mxu0 %vm587_vm0, %v5007_v0  ;;  %5055 = vmatmul.mubr.msk.bf16.gmra.mrb[40].mxu1 %vm587_vm0, %v5007_v0 }
 0x171   : > { %3094 = vmatprep.mubr.bf16.mxu0 %v5958_v2  ;;  %3287 = vmatprep.mubr.bf16.mxu1 %v5958_v2 }
 0x178   : > { %5040 = vmatmul.mubr.msk.bf16.gmra.mrb[44].mxu0 %vm587_vm0, %v5008_v11  ;;  %5056 = vmatmul.mubr.msk.bf16.gmra.mrb[44].mxu1 %vm587_vm0, %v5008_v11 }
 0x179   : > { %3104 = vmatprep.mubr.bf16.mxu0 %v5958_v2  ;;  %3297 = vmatprep.mubr.bf16.mxu1 %v5958_v2 }
 0x180   : > { %5041 = vmatmul.mubr.msk.bf16.gmra.mrb[48].mxu0 %vm587_vm0, %v5009_v22  ;;  %5057 = vmatmul.mubr.msk.bf16.gmra.mrb[48].mxu1 %vm587_vm0, %v5009_v22 }
 0x181   : > { %3114 = vmatprep.mubr.bf16.mxu0 %v5958_v2  ;;  %3307 = vmatprep.mubr.bf16.mxu1 %v5958_v2 }
 0x188   : > { %5042 = vmatmul.mubr.msk.bf16.gmra.mrb[52].mxu0 %vm587_vm0, %v5010_v32  ;;  %5058 = vmatmul.mubr.msk.bf16.gmra.mrb[52].mxu1 %vm587_vm0, %v5010_v32 }
 0x189   : > { %3124 = vmatprep.mubr.bf16.mxu0 %v5958_v2  ;;  %3317 = vmatprep.mubr.bf16.mxu1 %v5958_v2 }
 0x190   : > { %5043 = vmatmul.mubr.msk.bf16.gmra.mrb[56].mxu0 %vm587_vm0, %v5011_v42  ;;  %5059 = vmatmul.mubr.msk.bf16.gmra.mrb[56].mxu1 %vm587_vm0, %v5011_v42 }
 0x191   : > { %3134 = vmatprep.mubr.bf16.mxu0 %v5958_v2  ;;  %3327 = vmatprep.mubr.bf16.mxu1 %v5958_v2  ;;  %v3858_v2 = vsub.s32 1, %v3853_v50 }
 0x193   : > { %v6666_v20 = vrot.slane %v3850_v53, %v3858_v2 }
 0x198   : > { %5044 = vmatmul.mubr.msk.bf16.gmra.mrb[60].mxu0 %vm587_vm0, %v5012_v48  ;;  %5060 = vmatmul.mubr.msk.bf16.gmra.mrb[60].mxu1 %vm587_vm0, %v5012_v48 }
 0x199   : > { %4196 = vmatprep.mubr.f32.mxu0 %v4129_v9  ;;  %4273 = vmatprep.mubr.f32.mxu1 %v4129_v9 }
 0x1f3   : > { %v2986_v58 = vpop.f32.mrb[0].mxu0  ;;  %v3179_v59 = vpop.f32.mrb[0].mxu1 }
 0x1f4   : > { %v3872_v60 = vadd.f32 %v6662_v55, %v2986_v58  ;;  %v3874_v61 = vadd.f32 %v6664_v56, %v3179_v59  ;;  %v2988_v62 = vpop.f32.mrb[1].mxu0  ;;  %v3181_v63 = vpop.f32.mrb[1].mxu1 }
 0x1f5   : > { %v3873_v0 = vadd.f32 %v6666_v20, %v2988_v62  ;;  %v3875_v1 = vadd.f32 %v6668_v57, %v3181_v63  ;;  %v2990_v3 = vpop.f32.mrb[2].mxu0  ;;  %v3183_v4 = vpop.f32.mrb[2].mxu1 }
 0x1f6   : > { %v3876_v5 = vadd.f32 %v6662_v55, %v2990_v3  ;;  %v3878_v6 = vadd.f32 %v6664_v56, %v3183_v4  ;;  %v2992_v7 = vpop.f32.mrb[3].mxu0  ;;  %v3185_v8 = vpop.f32.mrb[3].mxu1  ;;  %v4000_v13 = vmax.f32 %v3872_v60, 0.0  ;;  %v4002_v14 = vmax.f32 %v3874_v61, 0.0 }
 0x1f7   : > { %v3877_v10 = vadd.f32 %v6666_v20, %v2992_v7  ;;  %v3879_v11 = vadd.f32 %v6668_v57, %v3185_v8  ;;  %v4001_v17 = vmax.f32 %v3873_v0, 0.0  ;;  %v4003_v18 = vmax.f32 %v3875_v1, 0.0 }
 0x1f8   : > { %v4004_v15 = vmax.f32 %v3876_v5, 0.0  ;;  %v4006_v16 = vmax.f32 %v3878_v6, 0.0 }
 0x1f9   : > { %v4005_v19 = vmax.f32 %v3877_v10, 0.0  ;;  %v4007_v21 = vmax.f32 %v3879_v11, 0.0 }
 0x1fa   : > { %v5253_v12 = vpack.c.bf16 %v4004_v15, %v4000_v13  ;;  %v5317_v22 = vpack.c.bf16 %v4006_v16, %v4002_v14 }
 0x1fb   : > { %v5251_v23 = vpack.c.bf16 %v4005_v19, %v4001_v17  ;;  %v5315_v24 = vpack.c.bf16 %v4007_v21, %v4003_v18  ;;  %v2996_v25 = vpop.f32.mrb[4].mxu0  ;;  %v3189_v26 = vpop.f32.mrb[4].mxu1 }
 0x1fc   : > { %v3880_v27 = vadd.f32 %v6662_v55, %v2996_v25  ;;  %v3882_v28 = vadd.f32 %v6664_v56, %v3189_v26  ;;  %v2998_v29 = vpop.f32.mrb[5].mxu0  ;;  %v3191_v30 = vpop.f32.mrb[5].mxu1 }
 0x1fd   : > { %v3881_v31 = vadd.f32 %v6666_v20, %v2998_v29  ;;  %v3883_v32 = vadd.f32 %v6668_v57, %v3191_v30  ;;  %v3000_v33 = vpop.f32.mrb[6].mxu0  ;;  %v3193_v34 = vpop.f32.mrb[6].mxu1  ;;  %5252 = vmatprep.subr.bf16.mxu0 %v5251_v23  ;;  %5316 = vmatprep.subr.bf16.mxu1 %v5315_v24 }
 0x1fe   : > { %v3884_v35 = vadd.f32 %v6662_v55, %v3000_v33  ;;  %v3886_v36 = vadd.f32 %v6664_v56, %v3193_v34  ;;  %v3002_v37 = vpop.f32.mrb[7].mxu0  ;;  %v3195_v38 = vpop.f32.mrb[7].mxu1  ;;  %5254 = vmatpush1.bf16.msra.mxu0 %v5253_v12  ;;  %5318 = vmatpush1.bf16.msra.mxu1 %v5317_v22  ;;  %v4008_v41 = vmax.f32 %v3880_v27, 0.0  ;;  %v4010_v42 = vmax.f32 %v3882_v28, 0.0 }
 0x1ff   : > { %v3885_v39 = vadd.f32 %v6666_v20, %v3002_v37  ;;  %v3887_v40 = vadd.f32 %v6668_v57, %v3195_v38  ;;  %v4009_v45 = vmax.f32 %v3881_v31, 0.0  ;;  %v4011_v46 = vmax.f32 %v3883_v32, 0.0 }
 0x200   : > { %v4012_v43 = vmax.f32 %v3884_v35, 0.0  ;;  %v4014_v44 = vmax.f32 %v3886_v36, 0.0 }
 0x201   : > { %v4013_v47 = vmax.f32 %v3885_v39, 0.0  ;;  %v4015_v48 = vmax.f32 %v3887_v40, 0.0 }
 0x202   : > { %v5257_v49 = vpack.c.bf16 %v4012_v43, %v4008_v41  ;;  %v5321_v50 = vpack.c.bf16 %v4014_v44, %v4010_v42 }
 0x203   : > { %v5255_v51 = vpack.c.bf16 %v4013_v47, %v4009_v45  ;;  %v5319_v52 = vpack.c.bf16 %v4015_v48, %v4011_v46  ;;  %v3006_v53 = vpop.f32.mrb[8].mxu0  ;;  %v3199_v2 = vpop.f32.mrb[8].mxu1 }
 0x204   : > { %v3888_v54 = vadd.f32 %v6662_v55, %v3006_v53  ;;  %v3890_v58 = vadd.f32 %v6664_v56, %v3199_v2  ;;  %v3008_v59 = vpop.f32.mrb[9].mxu0  ;;  %v3201_v60 = vpop.f32.mrb[9].mxu1 }
 0x205   : > { %v3889_v61 = vadd.f32 %v6666_v20, %v3008_v59  ;;  %v3891_v62 = vadd.f32 %v6668_v57, %v3201_v60  ;;  %v3010_v63 = vpop.f32.mrb[10].mxu0  ;;  %v3203_v0 = vpop.f32.mrb[10].mxu1  ;;  %5256 = vmatprep.subr.bf16.mxu0 %v5255_v51  ;;  %5320 = vmatprep.subr.bf16.mxu1 %v5319_v52 }
 0x206   : > { %v3892_v1 = vadd.f32 %v6662_v55, %v3010_v63  ;;  %v3894_v3 = vadd.f32 %v6664_v56, %v3203_v0  ;;  %v3012_v4 = vpop.f32.mrb[11].mxu0  ;;  %v3205_v5 = vpop.f32.mrb[11].mxu1  ;;  %5258 = vmatpush1.bf16.msra.mxu0 %v5257_v49  ;;  %5322 = vmatpush1.bf16.msra.mxu1 %v5321_v50  ;;  %v4016_v8 = vmax.f32 %v3888_v54, 0.0  ;;  %v4018_v9 = vmax.f32 %v3890_v58, 0.0 }
 0x207   : > { %v3893_v6 = vadd.f32 %v6666_v20, %v3012_v4  ;;  %v3895_v7 = vadd.f32 %v6668_v57, %v3205_v5  ;;  %v4017_v13 = vmax.f32 %v3889_v61, 0.0  ;;  %v4019_v14 = vmax.f32 %v3891_v62, 0.0 }
 0x208   : > { %v4020_v10 = vmax.f32 %v3892_v1, 0.0  ;;  %v4022_v11 = vmax.f32 %v3894_v3, 0.0 }
 0x209   : > { %v4021_v15 = vmax.f32 %v3893_v6, 0.0  ;;  %v4023_v16 = vmax.f32 %v3895_v7, 0.0 }
 0x20a   : > { %v5261_v17 = vpack.c.bf16 %v4020_v10, %v4016_v8  ;;  %v5325_v18 = vpack.c.bf16 %v4022_v11, %v4018_v9 }
 0x20b   : > { %v5259_v19 = vpack.c.bf16 %v4021_v15, %v4017_v13  ;;  %v5323_v21 = vpack.c.bf16 %v4023_v16, %v4019_v14  ;;  %v3016_v12 = vpop.f32.mrb[12].mxu0  ;;  %v3209_v22 = vpop.f32.mrb[12].mxu1 }
 0x20c   : > { %v3896_v23 = vadd.f32 %v6662_v55, %v3016_v12  ;;  %v3898_v24 = vadd.f32 %v6664_v56, %v3209_v22  ;;  %v3018_v25 = vpop.f32.mrb[13].mxu0  ;;  %v3211_v26 = vpop.f32.mrb[13].mxu1 }
 0x20d   : > { %v3897_v27 = vadd.f32 %v6666_v20, %v3018_v25  ;;  %v3899_v28 = vadd.f32 %v6668_v57, %v3211_v26  ;;  %v3020_v29 = vpop.f32.mrb[14].mxu0  ;;  %v3213_v30 = vpop.f32.mrb[14].mxu1  ;;  %5260 = vmatprep.subr.bf16.mxu0 %v5259_v19  ;;  %5324 = vmatprep.subr.bf16.mxu1 %v5323_v21 }
 0x20e   : > { %v3900_v31 = vadd.f32 %v6662_v55, %v3020_v29  ;;  %v3902_v32 = vadd.f32 %v6664_v56, %v3213_v30  ;;  %v3022_v33 = vpop.f32.mrb[15].mxu0  ;;  %v3215_v34 = vpop.f32.mrb[15].mxu1  ;;  %5262 = vmatpush1.bf16.msra.mxu0 %v5261_v17  ;;  %5326 = vmatpush1.bf16.msra.mxu1 %v5325_v18  ;;  %v4024_v37 = vmax.f32 %v3896_v23, 0.0  ;;  %v4026_v38 = vmax.f32 %v3898_v24, 0.0 }
 0x20f   : > { %v3901_v35 = vadd.f32 %v6666_v20, %v3022_v33  ;;  %v3903_v36 = vadd.f32 %v6668_v57, %v3215_v34  ;;  %v4025_v41 = vmax.f32 %v3897_v27, 0.0  ;;  %v4027_v42 = vmax.f32 %v3899_v28, 0.0 }
 0x210   : > { %v4028_v39 = vmax.f32 %v3900_v31, 0.0  ;;  %v4030_v40 = vmax.f32 %v3902_v32, 0.0 }
 0x211   : > { %v4029_v43 = vmax.f32 %v3901_v35, 0.0  ;;  %v4031_v44 = vmax.f32 %v3903_v36, 0.0 }
 0x212   : > { %v5265_v45 = vpack.c.bf16 %v4028_v39, %v4024_v37  ;;  %v5329_v46 = vpack.c.bf16 %v4030_v40, %v4026_v38 }
 0x213   : > { %v5263_v47 = vpack.c.bf16 %v4029_v43, %v4025_v41  ;;  %v5327_v48 = vpack.c.bf16 %v4031_v44, %v4027_v42  ;;  %v3026_v49 = vpop.f32.mrb[16].mxu0  ;;  %v3219_v50 = vpop.f32.mrb[16].mxu1 }
 0x214   : > { %v3904_v51 = vadd.f32 %v6662_v55, %v3026_v49  ;;  %v3906_v52 = vadd.f32 %v6664_v56, %v3219_v50  ;;  %v3028_v53 = vpop.f32.mrb[17].mxu0  ;;  %v3221_v2 = vpop.f32.mrb[17].mxu1 }
 0x215   : > { %v3905_v54 = vadd.f32 %v6666_v20, %v3028_v53  ;;  %v3907_v58 = vadd.f32 %v6668_v57, %v3221_v2  ;;  %v3030_v59 = vpop.f32.mrb[18].mxu0  ;;  %v3223_v60 = vpop.f32.mrb[18].mxu1  ;;  %5264 = vmatprep.subr.bf16.mxu0 %v5263_v47  ;;  %5328 = vmatprep.subr.bf16.mxu1 %v5327_v48 }
 0x216   : > { %v3908_v61 = vadd.f32 %v6662_v55, %v3030_v59  ;;  %v3910_v62 = vadd.f32 %v6664_v56, %v3223_v60  ;;  %v3032_v63 = vpop.f32.mrb[19].mxu0  ;;  %v3225_v0 = vpop.f32.mrb[19].mxu1  ;;  %5266 = vmatpush1.bf16.msra.mxu0 %v5265_v45  ;;  %5330 = vmatpush1.bf16.msra.mxu1 %v5329_v46  ;;  %v4032_v4 = vmax.f32 %v3904_v51, 0.0  ;;  %v4034_v5 = vmax.f32 %v3906_v52, 0.0 }
 0x217   : > { %v3909_v1 = vadd.f32 %v6666_v20, %v3032_v63  ;;  %v3911_v3 = vadd.f32 %v6668_v57, %v3225_v0  ;;  %v4033_v8 = vmax.f32 %v3905_v54, 0.0  ;;  %v4035_v9 = vmax.f32 %v3907_v58, 0.0 }
 0x218   : > { %v4036_v6 = vmax.f32 %v3908_v61, 0.0  ;;  %v4038_v7 = vmax.f32 %v3910_v62, 0.0 }
 0x219   : > { %v4037_v10 = vmax.f32 %v3909_v1, 0.0  ;;  %v4039_v11 = vmax.f32 %v3911_v3, 0.0 }
 0x21a   : > { %v5269_v13 = vpack.c.bf16 %v4036_v6, %v4032_v4  ;;  %v5333_v14 = vpack.c.bf16 %v4038_v7, %v4034_v5 }
 0x21b   : > { %v5267_v15 = vpack.c.bf16 %v4037_v10, %v4033_v8  ;;  %v5331_v16 = vpack.c.bf16 %v4039_v11, %v4035_v9  ;;  %v3036_v17 = vpop.f32.mrb[20].mxu0  ;;  %v3229_v18 = vpop.f32.mrb[20].mxu1 }
 0x21c   : > { %v3912_v19 = vadd.f32 %v6662_v55, %v3036_v17  ;;  %v3914_v21 = vadd.f32 %v6664_v56, %v3229_v18  ;;  %v3038_v12 = vpop.f32.mrb[21].mxu0  ;;  %v3231_v22 = vpop.f32.mrb[21].mxu1 }
 0x21d   : > { %v3913_v23 = vadd.f32 %v6666_v20, %v3038_v12  ;;  %v3915_v24 = vadd.f32 %v6668_v57, %v3231_v22  ;;  %v3040_v25 = vpop.f32.mrb[22].mxu0  ;;  %v3233_v26 = vpop.f32.mrb[22].mxu1  ;;  %5268 = vmatprep.subr.bf16.mxu0 %v5267_v15  ;;  %5332 = vmatprep.subr.bf16.mxu1 %v5331_v16 }
 0x21e   : > { %v3916_v27 = vadd.f32 %v6662_v55, %v3040_v25  ;;  %v3918_v28 = vadd.f32 %v6664_v56, %v3233_v26  ;;  %v3042_v29 = vpop.f32.mrb[23].mxu0  ;;  %v3235_v30 = vpop.f32.mrb[23].mxu1  ;;  %5270 = vmatpush1.bf16.msra.mxu0 %v5269_v13  ;;  %5334 = vmatpush1.bf16.msra.mxu1 %v5333_v14  ;;  %v4040_v33 = vmax.f32 %v3912_v19, 0.0  ;;  %v4042_v34 = vmax.f32 %v3914_v21, 0.0 }
 0x21f   : > { %v3917_v31 = vadd.f32 %v6666_v20, %v3042_v29  ;;  %v3919_v32 = vadd.f32 %v6668_v57, %v3235_v30  ;;  %v4041_v37 = vmax.f32 %v3913_v23, 0.0  ;;  %v4043_v38 = vmax.f32 %v3915_v24, 0.0 }
 0x220   : > { %v4044_v35 = vmax.f32 %v3916_v27, 0.0  ;;  %v4046_v36 = vmax.f32 %v3918_v28, 0.0 }
 0x221   : > { %v4045_v39 = vmax.f32 %v3917_v31, 0.0  ;;  %v4047_v40 = vmax.f32 %v3919_v32, 0.0 }
 0x222   : > { %v5273_v41 = vpack.c.bf16 %v4044_v35, %v4040_v33  ;;  %v5337_v42 = vpack.c.bf16 %v4046_v36, %v4042_v34 }
 0x223   : > { %v5271_v43 = vpack.c.bf16 %v4045_v39, %v4041_v37  ;;  %v5335_v44 = vpack.c.bf16 %v4047_v40, %v4043_v38  ;;  %v3046_v45 = vpop.f32.mrb[24].mxu0  ;;  %v3239_v46 = vpop.f32.mrb[24].mxu1 }
 0x224   : > { %v3920_v47 = vadd.f32 %v6662_v55, %v3046_v45  ;;  %v3922_v48 = vadd.f32 %v6664_v56, %v3239_v46  ;;  %v3048_v49 = vpop.f32.mrb[25].mxu0  ;;  %v3241_v50 = vpop.f32.mrb[25].mxu1 }
 0x225   : > { %v3921_v51 = vadd.f32 %v6666_v20, %v3048_v49  ;;  %v3923_v52 = vadd.f32 %v6668_v57, %v3241_v50  ;;  %v3050_v53 = vpop.f32.mrb[26].mxu0  ;;  %v3243_v2 = vpop.f32.mrb[26].mxu1  ;;  %5272 = vmatprep.subr.bf16.mxu0 %v5271_v43  ;;  %5336 = vmatprep.subr.bf16.mxu1 %v5335_v44 }
 0x226   : > { %v3924_v54 = vadd.f32 %v6662_v55, %v3050_v53  ;;  %v3926_v58 = vadd.f32 %v6664_v56, %v3243_v2  ;;  %v3052_v59 = vpop.f32.mrb[27].mxu0  ;;  %v3245_v60 = vpop.f32.mrb[27].mxu1  ;;  %5274 = vmatpush1.bf16.msra.mxu0 %v5273_v41  ;;  %5338 = vmatpush1.bf16.msra.mxu1 %v5337_v42  ;;  %v4048_v63 = vmax.f32 %v3920_v47, 0.0  ;;  %v4050_v0 = vmax.f32 %v3922_v48, 0.0 }
 0x227   : > { %v3925_v61 = vadd.f32 %v6666_v20, %v3052_v59  ;;  %v3927_v62 = vadd.f32 %v6668_v57, %v3245_v60  ;;  %v4049_v4 = vmax.f32 %v3921_v51, 0.0  ;;  %v4051_v5 = vmax.f32 %v3923_v52, 0.0 }
 0x228   : > { %v4052_v1 = vmax.f32 %v3924_v54, 0.0  ;;  %v4054_v3 = vmax.f32 %v3926_v58, 0.0 }
 0x229   : > { %v4053_v6 = vmax.f32 %v3925_v61, 0.0  ;;  %v4055_v7 = vmax.f32 %v3927_v62, 0.0 }
 0x22a   : > { %v5277_v8 = vpack.c.bf16 %v4052_v1, %v4048_v63  ;;  %v5341_v9 = vpack.c.bf16 %v4054_v3, %v4050_v0 }
 0x22b   : > { %v5275_v10 = vpack.c.bf16 %v4053_v6, %v4049_v4  ;;  %v5339_v11 = vpack.c.bf16 %v4055_v7, %v4051_v5  ;;  %v3056_v13 = vpop.f32.mrb[28].mxu0  ;;  %v3249_v14 = vpop.f32.mrb[28].mxu1 }
 0x22c   : > { %v3928_v15 = vadd.f32 %v6662_v55, %v3056_v13  ;;  %v3930_v16 = vadd.f32 %v6664_v56, %v3249_v14  ;;  %v3058_v17 = vpop.f32.mrb[29].mxu0  ;;  %v3251_v18 = vpop.f32.mrb[29].mxu1 }
 0x22d   : > { %v3929_v19 = vadd.f32 %v6666_v20, %v3058_v17  ;;  %v3931_v21 = vadd.f32 %v6668_v57, %v3251_v18  ;;  %v3060_v12 = vpop.f32.mrb[30].mxu0  ;;  %v3253_v22 = vpop.f32.mrb[30].mxu1  ;;  %5276 = vmatprep.subr.bf16.mxu0 %v5275_v10  ;;  %5340 = vmatprep.subr.bf16.mxu1 %v5339_v11 }
 0x22e   : > { %v3932_v23 = vadd.f32 %v6662_v55, %v3060_v12  ;;  %v3934_v24 = vadd.f32 %v6664_v56, %v3253_v22  ;;  %v3062_v25 = vpop.f32.mrb[31].mxu0  ;;  %v3255_v26 = vpop.f32.mrb[31].mxu1  ;;  %5278 = vmatpush1.bf16.msra.mxu0 %v5277_v8  ;;  %5342 = vmatpush1.bf16.msra.mxu1 %v5341_v9  ;;  %v4056_v29 = vmax.f32 %v3928_v15, 0.0  ;;  %v4058_v30 = vmax.f32 %v3930_v16, 0.0 }
 0x22f   : > { %v3933_v27 = vadd.f32 %v6666_v20, %v3062_v25  ;;  %v3935_v28 = vadd.f32 %v6668_v57, %v3255_v26  ;;  %v4057_v33 = vmax.f32 %v3929_v19, 0.0  ;;  %v4059_v34 = vmax.f32 %v3931_v21, 0.0 }
 0x230   : > { %v4060_v31 = vmax.f32 %v3932_v23, 0.0  ;;  %v4062_v32 = vmax.f32 %v3934_v24, 0.0 }
 0x231   : > { %v4061_v35 = vmax.f32 %v3933_v27, 0.0  ;;  %v4063_v36 = vmax.f32 %v3935_v28, 0.0 }
 0x232   : > { %v5281_v37 = vpack.c.bf16 %v4060_v31, %v4056_v29  ;;  %v5345_v38 = vpack.c.bf16 %v4062_v32, %v4058_v30 }
 0x233   : > { %v5279_v39 = vpack.c.bf16 %v4061_v35, %v4057_v33  ;;  %v5343_v40 = vpack.c.bf16 %v4063_v36, %v4059_v34  ;;  %v3066_v41 = vpop.f32.mrb[32].mxu0  ;;  %v3259_v42 = vpop.f32.mrb[32].mxu1 }
 0x234   : > { %v3936_v43 = vadd.f32 %v6662_v55, %v3066_v41  ;;  %v3938_v44 = vadd.f32 %v6664_v56, %v3259_v42  ;;  %v3068_v45 = vpop.f32.mrb[33].mxu0  ;;  %v3261_v46 = vpop.f32.mrb[33].mxu1 }
 0x235   : > { %v3937_v47 = vadd.f32 %v6666_v20, %v3068_v45  ;;  %v3939_v48 = vadd.f32 %v6668_v57, %v3261_v46  ;;  %v3070_v49 = vpop.f32.mrb[34].mxu0  ;;  %v3263_v50 = vpop.f32.mrb[34].mxu1  ;;  %5280 = vmatprep.subr.bf16.mxu0 %v5279_v39  ;;  %5344 = vmatprep.subr.bf16.mxu1 %v5343_v40 }
 0x236   : > { %v3940_v51 = vadd.f32 %v6662_v55, %v3070_v49  ;;  %v3942_v52 = vadd.f32 %v6664_v56, %v3263_v50  ;;  %v3072_v53 = vpop.f32.mrb[35].mxu0  ;;  %v3265_v2 = vpop.f32.mrb[35].mxu1  ;;  %5282 = vmatpush1.bf16.msra.mxu0 %v5281_v37  ;;  %5346 = vmatpush1.bf16.msra.mxu1 %v5345_v38  ;;  %v4064_v59 = vmax.f32 %v3936_v43, 0.0  ;;  %v4066_v60 = vmax.f32 %v3938_v44, 0.0 }
 0x237   : > { %v3941_v54 = vadd.f32 %v6666_v20, %v3072_v53  ;;  %v3943_v58 = vadd.f32 %v6668_v57, %v3265_v2  ;;  %v4065_v63 = vmax.f32 %v3937_v47, 0.0  ;;  %v4067_v0 = vmax.f32 %v3939_v48, 0.0 }
 0x238   : > { %v4068_v61 = vmax.f32 %v3940_v51, 0.0  ;;  %v4070_v62 = vmax.f32 %v3942_v52, 0.0 }
 0x239   : > { %v4069_v1 = vmax.f32 %v3941_v54, 0.0  ;;  %v4071_v3 = vmax.f32 %v3943_v58, 0.0 }
 0x23a   : > { %v5285_v4 = vpack.c.bf16 %v4068_v61, %v4064_v59  ;;  %v5349_v5 = vpack.c.bf16 %v4070_v62, %v4066_v60 }
 0x23b   : > { %v5283_v6 = vpack.c.bf16 %v4069_v1, %v4065_v63  ;;  %v5347_v7 = vpack.c.bf16 %v4071_v3, %v4067_v0  ;;  %v3076_v8 = vpop.f32.mrb[36].mxu0  ;;  %v3269_v9 = vpop.f32.mrb[36].mxu1 }
 0x23c   : > { %v3944_v10 = vadd.f32 %v6662_v55, %v3076_v8  ;;  %v3946_v11 = vadd.f32 %v6664_v56, %v3269_v9  ;;  %v3078_v13 = vpop.f32.mrb[37].mxu0  ;;  %v3271_v14 = vpop.f32.mrb[37].mxu1 }
 0x23d   : > { %v3945_v15 = vadd.f32 %v6666_v20, %v3078_v13  ;;  %v3947_v16 = vadd.f32 %v6668_v57, %v3271_v14  ;;  %v3080_v17 = vpop.f32.mrb[38].mxu0  ;;  %v3273_v18 = vpop.f32.mrb[38].mxu1  ;;  %5284 = vmatprep.subr.bf16.mxu0 %v5283_v6  ;;  %5348 = vmatprep.subr.bf16.mxu1 %v5347_v7 }
 0x23e   : > { %v3948_v19 = vadd.f32 %v6662_v55, %v3080_v17  ;;  %v3950_v21 = vadd.f32 %v6664_v56, %v3273_v18  ;;  %v3082_v12 = vpop.f32.mrb[39].mxu0  ;;  %v3275_v22 = vpop.f32.mrb[39].mxu1  ;;  %5286 = vmatpush1.bf16.msra.mxu0 %v5285_v4  ;;  %5350 = vmatpush1.bf16.msra.mxu1 %v5349_v5  ;;  %v4072_v25 = vmax.f32 %v3944_v10, 0.0  ;;  %v4074_v26 = vmax.f32 %v3946_v11, 0.0 }
 0x23f   : > { %v3949_v23 = vadd.f32 %v6666_v20, %v3082_v12  ;;  %v3951_v24 = vadd.f32 %v6668_v57, %v3275_v22  ;;  %v4073_v29 = vmax.f32 %v3945_v15, 0.0  ;;  %v4075_v30 = vmax.f32 %v3947_v16, 0.0 }
 0x240   : > { %v4076_v27 = vmax.f32 %v3948_v19, 0.0  ;;  %v4078_v28 = vmax.f32 %v3950_v21, 0.0 }
 0x241   : > { %v4077_v31 = vmax.f32 %v3949_v23, 0.0  ;;  %v4079_v32 = vmax.f32 %v3951_v24, 0.0 }
 0x242   : > { %v5289_v33 = vpack.c.bf16 %v4076_v27, %v4072_v25  ;;  %v5353_v34 = vpack.c.bf16 %v4078_v28, %v4074_v26 }
 0x243   : > { %v5287_v35 = vpack.c.bf16 %v4077_v31, %v4073_v29  ;;  %v5351_v36 = vpack.c.bf16 %v4079_v32, %v4075_v30  ;;  %v3086_v37 = vpop.f32.mrb[40].mxu0  ;;  %v3279_v38 = vpop.f32.mrb[40].mxu1 }
 0x244   : > { %v3952_v39 = vadd.f32 %v6662_v55, %v3086_v37  ;;  %v3954_v40 = vadd.f32 %v6664_v56, %v3279_v38  ;;  %v3088_v41 = vpop.f32.mrb[41].mxu0  ;;  %v3281_v42 = vpop.f32.mrb[41].mxu1 }
 0x245   : > { %v3953_v43 = vadd.f32 %v6666_v20, %v3088_v41  ;;  %v3955_v44 = vadd.f32 %v6668_v57, %v3281_v42  ;;  %v3090_v45 = vpop.f32.mrb[42].mxu0  ;;  %v3283_v46 = vpop.f32.mrb[42].mxu1  ;;  %5288 = vmatprep.subr.bf16.mxu0 %v5287_v35  ;;  %5352 = vmatprep.subr.bf16.mxu1 %v5351_v36 }
 0x246   : > { %v3956_v47 = vadd.f32 %v6662_v55, %v3090_v45  ;;  %v3958_v48 = vadd.f32 %v6664_v56, %v3283_v46  ;;  %v3092_v49 = vpop.f32.mrb[43].mxu0  ;;  %v3285_v50 = vpop.f32.mrb[43].mxu1  ;;  %5290 = vmatpush1.bf16.msra.mxu0 %v5289_v33  ;;  %5354 = vmatpush1.bf16.msra.mxu1 %v5353_v34  ;;  %v4080_v53 = vmax.f32 %v3952_v39, 0.0  ;;  %v4082_v2 = vmax.f32 %v3954_v40, 0.0 }
 0x247   : > { %v3957_v51 = vadd.f32 %v6666_v20, %v3092_v49  ;;  %v3959_v52 = vadd.f32 %v6668_v57, %v3285_v50  ;;  %v4081_v59 = vmax.f32 %v3953_v43, 0.0  ;;  %v4083_v60 = vmax.f32 %v3955_v44, 0.0 }
 0x248   : > { %v4084_v54 = vmax.f32 %v3956_v47, 0.0  ;;  %v4086_v58 = vmax.f32 %v3958_v48, 0.0 }
 0x249   : > { %v4085_v61 = vmax.f32 %v3957_v51, 0.0  ;;  %v4087_v62 = vmax.f32 %v3959_v52, 0.0 }
 0x24a   : > { %v5293_v63 = vpack.c.bf16 %v4084_v54, %v4080_v53  ;;  %v5357_v0 = vpack.c.bf16 %v4086_v58, %v4082_v2 }
 0x24b   : > { %v5291_v1 = vpack.c.bf16 %v4085_v61, %v4081_v59  ;;  %v5355_v3 = vpack.c.bf16 %v4087_v62, %v4083_v60  ;;  %v3096_v4 = vpop.f32.mrb[44].mxu0  ;;  %v3289_v5 = vpop.f32.mrb[44].mxu1 }
 0x24c   : > { %v3960_v6 = vadd.f32 %v6662_v55, %v3096_v4  ;;  %v3962_v7 = vadd.f32 %v6664_v56, %v3289_v5  ;;  %v3098_v8 = vpop.f32.mrb[45].mxu0  ;;  %v3291_v9 = vpop.f32.mrb[45].mxu1 }
 0x24d   : > { %v3961_v10 = vadd.f32 %v6666_v20, %v3098_v8  ;;  %v3963_v11 = vadd.f32 %v6668_v57, %v3291_v9  ;;  %v3100_v13 = vpop.f32.mrb[46].mxu0  ;;  %v3293_v14 = vpop.f32.mrb[46].mxu1  ;;  %5292 = vmatprep.subr.bf16.mxu0 %v5291_v1  ;;  %5356 = vmatprep.subr.bf16.mxu1 %v5355_v3 }
 0x24e   : > { %v3964_v15 = vadd.f32 %v6662_v55, %v3100_v13  ;;  %v3966_v16 = vadd.f32 %v6664_v56, %v3293_v14  ;;  %v3102_v17 = vpop.f32.mrb[47].mxu0  ;;  %v3295_v18 = vpop.f32.mrb[47].mxu1  ;;  %5294 = vmatpush1.bf16.msra.mxu0 %v5293_v63  ;;  %5358 = vmatpush1.bf16.msra.mxu1 %v5357_v0  ;;  %v4088_v12 = vmax.f32 %v3960_v6, 0.0  ;;  %v4090_v22 = vmax.f32 %v3962_v7, 0.0 }
 0x24f   : > { %v3965_v19 = vadd.f32 %v6666_v20, %v3102_v17  ;;  %v3967_v21 = vadd.f32 %v6668_v57, %v3295_v18  ;;  %v4089_v25 = vmax.f32 %v3961_v10, 0.0  ;;  %v4091_v26 = vmax.f32 %v3963_v11, 0.0 }
 0x250   : > { %v4092_v23 = vmax.f32 %v3964_v15, 0.0  ;;  %v4094_v24 = vmax.f32 %v3966_v16, 0.0 }
 0x251   : > { %v4093_v27 = vmax.f32 %v3965_v19, 0.0  ;;  %v4095_v28 = vmax.f32 %v3967_v21, 0.0 }
 0x252   : > { %v5297_v29 = vpack.c.bf16 %v4092_v23, %v4088_v12  ;;  %v5361_v30 = vpack.c.bf16 %v4094_v24, %v4090_v22 }
 0x253   : > { %v5295_v31 = vpack.c.bf16 %v4093_v27, %v4089_v25  ;;  %v5359_v32 = vpack.c.bf16 %v4095_v28, %v4091_v26  ;;  %v3106_v33 = vpop.f32.mrb[48].mxu0  ;;  %v3299_v34 = vpop.f32.mrb[48].mxu1 }
 0x254   : > { %v3968_v35 = vadd.f32 %v6662_v55, %v3106_v33  ;;  %v3970_v36 = vadd.f32 %v6664_v56, %v3299_v34  ;;  %v3108_v37 = vpop.f32.mrb[49].mxu0  ;;  %v3301_v38 = vpop.f32.mrb[49].mxu1 }
 0x255   : > { %v3969_v39 = vadd.f32 %v6666_v20, %v3108_v37  ;;  %v3971_v40 = vadd.f32 %v6668_v57, %v3301_v38  ;;  %v3110_v41 = vpop.f32.mrb[50].mxu0  ;;  %v3303_v42 = vpop.f32.mrb[50].mxu1  ;;  %5296 = vmatprep.subr.bf16.mxu0 %v5295_v31  ;;  %5360 = vmatprep.subr.bf16.mxu1 %v5359_v32 }
 0x256   : > { %v3972_v43 = vadd.f32 %v6662_v55, %v3110_v41  ;;  %v3974_v44 = vadd.f32 %v6664_v56, %v3303_v42  ;;  %v3112_v45 = vpop.f32.mrb[51].mxu0  ;;  %v3305_v46 = vpop.f32.mrb[51].mxu1  ;;  %5298 = vmatpush1.bf16.msra.mxu0 %v5297_v29  ;;  %5362 = vmatpush1.bf16.msra.mxu1 %v5361_v30  ;;  %v4096_v49 = vmax.f32 %v3968_v35, 0.0  ;;  %v4098_v50 = vmax.f32 %v3970_v36, 0.0 }
 0x257   : > { %v3973_v47 = vadd.f32 %v6666_v20, %v3112_v45  ;;  %v3975_v48 = vadd.f32 %v6668_v57, %v3305_v46  ;;  %v4097_v53 = vmax.f32 %v3969_v39, 0.0  ;;  %v4099_v2 = vmax.f32 %v3971_v40, 0.0 }
 0x258   : > { %v4100_v51 = vmax.f32 %v3972_v43, 0.0  ;;  %v4102_v52 = vmax.f32 %v3974_v44, 0.0 }
 0x259   : > { %v4101_v54 = vmax.f32 %v3973_v47, 0.0  ;;  %v4103_v58 = vmax.f32 %v3975_v48, 0.0 }
 0x25a   : > { %v5301_v59 = vpack.c.bf16 %v4100_v51, %v4096_v49  ;;  %v5365_v60 = vpack.c.bf16 %v4102_v52, %v4098_v50 }
 0x25b   : > { %v5299_v61 = vpack.c.bf16 %v4101_v54, %v4097_v53  ;;  %v5363_v62 = vpack.c.bf16 %v4103_v58, %v4099_v2  ;;  %v3116_v63 = vpop.f32.mrb[52].mxu0  ;;  %v3309_v0 = vpop.f32.mrb[52].mxu1 }
 0x25c   : > { %v3976_v1 = vadd.f32 %v6662_v55, %v3116_v63  ;;  %v3978_v3 = vadd.f32 %v6664_v56, %v3309_v0  ;;  %v3118_v4 = vpop.f32.mrb[53].mxu0  ;;  %v3311_v5 = vpop.f32.mrb[53].mxu1 }
 0x25d   : > { %v3977_v6 = vadd.f32 %v6666_v20, %v3118_v4  ;;  %v3979_v7 = vadd.f32 %v6668_v57, %v3311_v5  ;;  %v3120_v8 = vpop.f32.mrb[54].mxu0  ;;  %v3313_v9 = vpop.f32.mrb[54].mxu1  ;;  %5300 = vmatprep.subr.bf16.mxu0 %v5299_v61  ;;  %5364 = vmatprep.subr.bf16.mxu1 %v5363_v62 }
 0x25e   : > { %v3980_v10 = vadd.f32 %v6662_v55, %v3120_v8  ;;  %v3982_v11 = vadd.f32 %v6664_v56, %v3313_v9  ;;  %v3122_v13 = vpop.f32.mrb[55].mxu0  ;;  %v3315_v14 = vpop.f32.mrb[55].mxu1  ;;  %5302 = vmatpush1.bf16.msra.mxu0 %v5301_v59  ;;  %5366 = vmatpush1.bf16.msra.mxu1 %v5365_v60  ;;  %v4104_v17 = vmax.f32 %v3976_v1, 0.0  ;;  %v4106_v18 = vmax.f32 %v3978_v3, 0.0 }
 0x25f   : > { %v3981_v15 = vadd.f32 %v6666_v20, %v3122_v13  ;;  %v3983_v16 = vadd.f32 %v6668_v57, %v3315_v14  ;;  %v4105_v12 = vmax.f32 %v3977_v6, 0.0  ;;  %v4107_v22 = vmax.f32 %v3979_v7, 0.0  ;;  %v4302_v13 = vld [vmem:[%s7166_s4 + $0x80] sm:$0xff]  ;;  %v4303_v14 = vld [vmem:[%s7166_s4 + $0x88] sm:$0xff] }
 0x260   : > { %v4108_v19 = vmax.f32 %v3980_v10, 0.0  ;;  %v4110_v21 = vmax.f32 %v3982_v11, 0.0 }
 0x261   : > { %v4109_v23 = vmax.f32 %v3981_v15, 0.0  ;;  %v4111_v24 = vmax.f32 %v3983_v16, 0.0 }
 0x262   : > { %v5305_v25 = vpack.c.bf16 %v4108_v19, %v4104_v17  ;;  %v5369_v26 = vpack.c.bf16 %v4110_v21, %v4106_v18  ;;  %v4334_v17 = vld [vmem:[%s7166_s4 + $0x180] sm:$0xff] }
 0x263   : > { %v5303_v27 = vpack.c.bf16 %v4109_v23, %v4105_v12  ;;  %v5367_v28 = vpack.c.bf16 %v4111_v24, %v4107_v22  ;;  %v3126_v29 = vpop.f32.mrb[56].mxu0  ;;  %v3319_v30 = vpop.f32.mrb[56].mxu1 }
 0x264   : > { %v3984_v31 = vadd.f32 %v6662_v55, %v3126_v29  ;;  %v3986_v32 = vadd.f32 %v6664_v56, %v3319_v30  ;;  %v3128_v33 = vpop.f32.mrb[57].mxu0  ;;  %v3321_v34 = vpop.f32.mrb[57].mxu1  ;;  %v4318_v29 = vld [vmem:[%s7166_s4 + $0x100] sm:$0xff]  ;;  %v4319_v30 = vld [vmem:[%s7166_s4 + $0x108] sm:$0xff] }
 0x265   : > { %v3985_v35 = vadd.f32 %v6666_v20, %v3128_v33  ;;  %v3987_v36 = vadd.f32 %v6668_v57, %v3321_v34  ;;  %v3130_v37 = vpop.f32.mrb[58].mxu0  ;;  %v3323_v38 = vpop.f32.mrb[58].mxu1  ;;  %5304 = vmatprep.subr.bf16.mxu0 %v5303_v27  ;;  %5368 = vmatprep.subr.bf16.mxu1 %v5367_v28  ;;  %v4286_v27 = vld [vmem:[%s7166_s4] sm:$0xff]  ;;  %v4287_v28 = vld [vmem:[%s7166_s4 + $0x8] sm:$0xff]  ;;  %v4336_v33 = vld [vmem:[%s7166_s4 + $0x190] sm:$0xff] }
 0x266   : > { %v3988_v39 = vadd.f32 %v6662_v55, %v3130_v37  ;;  %v3990_v40 = vadd.f32 %v6664_v56, %v3323_v38  ;;  %v3132_v41 = vpop.f32.mrb[59].mxu0  ;;  %v3325_v42 = vpop.f32.mrb[59].mxu1  ;;  %5306 = vmatpush1.bf16.msra.mxu0 %v5305_v25  ;;  %5370 = vmatpush1.bf16.msra.mxu1 %v5369_v26  ;;  %v4112_v45 = vmax.f32 %v3984_v31, 0.0  ;;  %v4114_v46 = vmax.f32 %v3986_v32, 0.0  ;;  %v4304_v31 = vld [vmem:[%s7166_s4 + $0x90] sm:$0xff]  ;;  %v4305_v32 = vld [vmem:[%s7166_s4 + $0x98] sm:$0xff] }
 0x267   : > { %v3989_v43 = vadd.f32 %v6666_v20, %v3132_v41  ;;  %v3991_v44 = vadd.f32 %v6668_v57, %v3325_v42  ;;  %v4113_v49 = vmax.f32 %v3985_v35, 0.0  ;;  %v4115_v50 = vmax.f32 %v3987_v36, 0.0  ;;  %v4337_v34 = vld [vmem:[%s7166_s4 + $0x198] sm:$0xff]  ;;  %v4128_v35 = vld [vmem:[%s7165_s3] sm:$0xff] }
 0x268   : > { %v4116_v47 = vmax.f32 %v3988_v39, 0.0  ;;  %v4118_v48 = vmax.f32 %v3990_v40, 0.0  ;;  %v5379_v25 = vpack.c.bf16 %v4303_v14, %v4302_v13  ;;  %v4131_v36 = vld [vmem:[%s7165_s3 + $0x18] sm:$0xff]  ;;  %v5381_v37 = vpack.c.bf16 %v4287_v28, %v4286_v27  ;;  %v4288_v39 = vld [vmem:[%s7166_s4 + $0x10] sm:$0xff]  ;;  %v4343_v13 = vld [vmem:[%s7166_s4 + $0x1c8] sm:$0xff] }
 0x269   : > { %v4117_v51 = vmax.f32 %v3989_v43, 0.0  ;;  %v4119_v52 = vmax.f32 %v3991_v44, 0.0  ;;  %v5413_v38 = vpack.c.bf16 %v4319_v30, %v4318_v29  ;;  %v4289_v40 = vld [vmem:[%s7166_s4 + $0x18] sm:$0xff]  ;;  %v5383_v41 = vpack.c.bf16 %v4305_v32, %v4304_v31  ;;  %v4320_v43 = vld [vmem:[%s7166_s4 + $0x110] sm:$0xff]  ;;  %v4314_v30 = vld [vmem:[%s7166_s4 + $0xe0] sm:$0xff] }
 0x26a   : > { %v5309_v53 = vpack.c.bf16 %v4116_v47, %v4112_v45  ;;  %v5373_v2 = vpack.c.bf16 %v4118_v48, %v4114_v46  ;;  %v5415_v42 = vpack.c.bf16 %v4337_v34, %v4336_v33  ;;  %v4321_v44 = vld [vmem:[%s7166_s4 + $0x118] sm:$0xff]  ;;  %v4306_v45 = vld [vmem:[%s7166_s4 + $0xa0] sm:$0xff]  ;;  %v4307_v46 = vld [vmem:[%s7166_s4 + $0xa8] sm:$0xff] }
 0x26b   : > { %v5307_v54 = vpack.c.bf16 %v4117_v51, %v4113_v49  ;;  %v5371_v58 = vpack.c.bf16 %v4119_v52, %v4115_v50  ;;  %v3136_v59 = vpop.f32.mrb[60].mxu0  ;;  %v3329_v60 = vpop.f32.mrb[60].mxu1  ;;  %v4338_v47 = vld [vmem:[%s7166_s4 + $0x1a0] sm:$0xff]  ;;  %v4339_v48 = vld [vmem:[%s7166_s4 + $0x1a8] sm:$0xff]  ;;  %v4130_v49 = vld [vmem:[%s7165_s3 + $0x10] sm:$0xff]  ;;  %v5385_v50 = vpack.c.bf16 %v4289_v40, %v4288_v39  ;;  %v5417_v51 = vpack.c.bf16 %v4321_v44, %v4320_v43 }
 0x26c   : > { %v3992_v61 = vadd.f32 %v6662_v55, %v3136_v59  ;;  %v3994_v62 = vadd.f32 %v6664_v56, %v3329_v60  ;;  %v3138_v63 = vpop.f32.mrb[61].mxu0  ;;  %v3331_v0 = vpop.f32.mrb[61].mxu1  ;;  %v4290_v52 = vld [vmem:[%s7166_s4 + $0x20] sm:$0xff]  ;;  %v4323_v59 = vld [vmem:[%s7166_s4 + $0x128] sm:$0xff]  ;;  %v4308_v60 = vld [vmem:[%s7166_s4 + $0xb0] sm:$0xff] }
 0x26d   : > { %v3993_v1 = vadd.f32 %v6666_v20, %v3138_v63  ;;  %v3995_v3 = vadd.f32 %v6668_v57, %v3331_v0  ;;  %v3140_v4 = vpop.f32.mrb[62].mxu0  ;;  %v3333_v5 = vpop.f32.mrb[62].mxu1  ;;  %5308 = vmatprep.subr.bf16.mxu0 %v5307_v54  ;;  %5372 = vmatprep.subr.bf16.mxu1 %v5371_v58  ;;  %v5419_v54 = vpack.c.bf16 %v4339_v48, %v4338_v47  ;;  %v4322_v58 = vld [vmem:[%s7166_s4 + $0x120] sm:$0xff]  ;;  %v4341_v63 = vld [vmem:[%s7166_s4 + $0x1b8] sm:$0xff]  ;;  %v4328_v28 = vld [vmem:[%s7166_s4 + $0x150] sm:$0xff] }
 0x26e   : > { %v3996_v6 = vadd.f32 %v6662_v55, %v3140_v4  ;;  %v3998_v7 = vadd.f32 %v6664_v56, %v3333_v5  ;;  %v3142_v8 = vpop.f32.mrb[63].mxu0  ;;  %v3335_v9 = vpop.f32.mrb[63].mxu1  ;;  %5310 = vmatpush1.bf16.msra.mxu0 %v5309_v53  ;;  %5374 = vmatpush1.bf16.msra.mxu1 %v5373_v2  ;;  %v4120_v15 = vmax.f32 %v3992_v61, 0.0  ;;  %v4122_v55 = vmax.f32 %v3994_v62, 0.0  ;;  %v4291_v53 = vld [vmem:[%s7166_s4 + $0x28] sm:$0xff]  ;;  %v4309_v61 = vld [vmem:[%s7166_s4 + $0xb8] sm:$0xff] }
 0x26f   : > { %v3997_v10 = vadd.f32 %v6666_v20, %v3142_v8  ;;  %v3999_v11 = vadd.f32 %v6668_v57, %v3335_v9  ;;  %v4335_v20 = vld [vmem:[%s7166_s4 + $0x188] sm:$0xff]  ;;  %v4121_v57 = vmax.f32 %v3993_v1, 0.0  ;;  %v4123_v18 = vmax.f32 %v3995_v3, 0.0  ;;  %v4340_v62 = vld [vmem:[%s7166_s4 + $0x1b0] sm:$0xff]  ;;  %v4293_v4 = vld [vmem:[%s7166_s4 + $0x38] sm:$0xff] }
 0x270   : > { %v4124_v16 = vmax.f32 %v3996_v6, 0.0  ;;  %v4126_v56 = vmax.f32 %v3998_v7, 0.0  ;;  %v5411_v26 = vpack.c.bf16 %v4335_v20, %v4334_v17  ;;  %v5387_v2 = vpack.c.bf16 %v4307_v46, %v4306_v45  ;;  %v4292_v3 = vld [vmem:[%s7166_s4 + $0x30] sm:$0xff]  ;;  %v4325_v8 = vld [vmem:[%s7166_s4 + $0x138] sm:$0xff]  ;;  %v4310_v9 = vld [vmem:[%s7166_s4 + $0xc0] sm:$0xff] }
 0x271   : > { %v4125_v19 = vmax.f32 %v3997_v10, 0.0  ;;  %v4127_v21 = vmax.f32 %v3999_v11, 0.0  ;;  %v5389_v0 = vpack.c.bf16 %v4291_v53, %v4290_v52  ;;  %v5421_v1 = vpack.c.bf16 %v4323_v59, %v4322_v58  ;;  %v4324_v7 = vld [vmem:[%s7166_s4 + $0x130] sm:$0xff]  ;;  %v4311_v10 = vld [vmem:[%s7166_s4 + $0xc8] sm:$0xff]  ;;  %v4342_v11 = vld [vmem:[%s7166_s4 + $0x1c0] sm:$0xff] }
 0x272   : > { %v5313_v12 = vpack.c.bf16 %v4124_v16, %v4120_v15  ;;  %v5377_v22 = vpack.c.bf16 %v4126_v56, %v4122_v55  ;;  %v5391_v5 = vpack.c.bf16 %v4309_v61, %v4308_v60  ;;  %v5423_v6 = vpack.c.bf16 %v4341_v63, %v4340_v62  ;;  %v4294_v55 = vld [vmem:[%s7166_s4 + $0x40] sm:$0xff]  ;;  %v4295_v16 = vld [vmem:[%s7166_s4 + $0x48] sm:$0xff]  ;;  %v4329_v29 = vld [vmem:[%s7166_s4 + $0x158] sm:$0xff] }
 0x273   : > { %v5311_v23 = vpack.c.bf16 %v4125_v19, %v4121_v57  ;;  %v5375_v24 = vpack.c.bf16 %v4127_v21, %v4123_v18  ;;  %v5393_v14 = vpack.c.bf16 %v4293_v4, %v4292_v3  ;;  %v5425_v15 = vpack.c.bf16 %v4325_v8, %v4324_v7  ;;  %v4326_v20 = vld [vmem:[%s7166_s4 + $0x140] sm:$0xff]  ;;  %v4327_v57 = vld [vmem:[%s7166_s4 + $0x148] sm:$0xff]  ;;  %v4312_v18 = vld [vmem:[%s7166_s4 + $0xd0] sm:$0xff] }
 0x274   : > { %v5395_v56 = vpack.c.bf16 %v4311_v10, %v4310_v9  ;;  %v5427_v17 = vpack.c.bf16 %v4343_v13, %v4342_v11  ;;  %v4313_v19 = vld [vmem:[%s7166_s4 + $0xd8] sm:$0xff]  ;;  %v4344_v21 = vld [vmem:[%s7166_s4 + $0x1d0] sm:$0xff]  ;;  %v4315_v31 = vld [vmem:[%s7166_s4 + $0xe8] sm:$0xff] }
 0x275   : > { %5312 = vmatprep.subr.bf16.mxu0 %v5311_v23  ;;  %5376 = vmatprep.subr.bf16.mxu1 %v5375_v24  ;;  %v5429_v23 = vpack.c.bf16 %v4327_v57, %v4326_v20  ;;  %v4296_v24 = vld [vmem:[%s7166_s4 + $0x50] sm:$0xff]  ;;  %v4346_v32 = vld [vmem:[%s7166_s4 + $0x1e0] sm:$0xff]  ;;  %v4347_v33 = vld [vmem:[%s7166_s4 + $0x1e8] sm:$0xff] }
 0x276   : > { %5314 = vmatpush1.bf16.msra.mxu0 %v5313_v12  ;;  %5378 = vmatpush1.bf16.msra.mxu1 %v5377_v22  ;;  %v4345_v12 = vld [vmem:[%s7166_s4 + $0x1d8] sm:$0xff]  ;;  %v5397_v22 = vpack.c.bf16 %v4295_v16, %v4294_v55  ;;  %v5435_v39 = vpack.c.bf16 %v4347_v33, %v4346_v32  ;;  %v4330_v40 = vld [vmem:[%s7166_s4 + $0x160] sm:$0xff]  ;;  %v4348_v44 = vld [vmem:[%s7166_s4 + $0x1f0] sm:$0xff] }
 0x277   : > { %5380 = vmatprep.subr.bf16.mxu0 %v5379_v25  ;;  %5412 = vmatprep.subr.bf16.mxu1 %v5411_v26  ;;  %v4297_v25 = vld [vmem:[%s7166_s4 + $0x58] sm:$0xff]  ;;  %v5399_v26 = vpack.c.bf16 %v4313_v19, %v4312_v18  ;;  %v5431_v27 = vpack.c.bf16 %v4345_v12, %v4344_v21  ;;  %v4332_v52 = vld [vmem:[%s7166_s4 + $0x170] sm:$0xff]  ;;  %v4502_v58 = vld [vmem:[%s7167_s5] sm:$0xff] }
 0x278   : > { %v5401_v34 = vpack.c.bf16 %v4297_v25, %v4296_v24  ;;  %v4317_v43 = vld [vmem:[%s7166_s4 + $0xf8] sm:$0xff]  ;;  %v4503_v59 = vld [vmem:[%s7167_s5 + $0x8] sm:$0xff]  ;;  %v4504_v61 = vld [vmem:[%s7167_s5 + $0x10] sm:$0xff] }
 0x279   : > { %4197 = vmatmul.mubr.f32.vlgmr.msra.gmra.mrb[64].mxu0 %v4128_v35  ;;  %4274 = vmatmul.mubr.f32.vlgmr.msra.gmra.mrb[64].mxu1 %v4128_v35  ;;  %v5433_v35 = vpack.c.bf16 %v4329_v29, %v4328_v28  ;;  %v4349_v45 = vld [vmem:[%s7166_s4 + $0x1f8] sm:$0xff]  ;;  %v5443_v60 = vpack.c.bf16 %v4503_v59, %v4502_v58  ;;  %v4508_v13 = vld [vmem:[%s7167_s5 + $0x30] sm:$0xff]  ;;  %v4510_v55 = vld [vmem:[%s7167_s5 + $0x40] sm:$0xff] }
 0x27a   : > { %4202 = vmatprep.mubr.f32.mxu0 %v4131_v36  ;;  %4279 = vmatprep.mubr.f32.mxu1 %v4131_v36  ;;  %v4298_v36 = vld [vmem:[%s7166_s4 + $0x60] sm:$0xff]  ;;  %v4505_v62 = vld [vmem:[%s7167_s5 + $0x18] sm:$0xff]  ;;  %v4511_v16 = vld [vmem:[%s7167_s5 + $0x48] sm:$0xff] }
 0x27b   : > { %5382 = vmatpush3.bf16.msra.mxu0 %v5381_v37  ;;  %5414 = vmatpush3.bf16.msra.mxu1 %v5413_v38  ;;  %v4299_v37 = vld [vmem:[%s7166_s4 + $0x68] sm:$0xff]  ;;  %v5403_v38 = vpack.c.bf16 %v4315_v31, %v4314_v30  ;;  %v5447_v4 = vpack.c.bf16 %v4505_v62, %v4504_v61  ;;  %v4513_v20 = vld [vmem:[%s7167_s5 + $0x58] sm:$0xff]  ;;  %v4514_v18 = vld [vmem:[%s7167_s5 + $0x60] sm:$0xff] }
 0x27c   : > { %5384 = vmatprep.subr.bf16.mxu0 %v5383_v41  ;;  %5416 = vmatprep.subr.bf16.mxu1 %v5415_v42  ;;  %v4331_v41 = vld [vmem:[%s7166_s4 + $0x168] sm:$0xff]  ;;  %v4316_v42 = vld [vmem:[%s7166_s4 + $0xf0] sm:$0xff]  ;;  %v5405_v46 = vpack.c.bf16 %v4299_v37, %v4298_v36  ;;  %v4602_v24 = vld [vmem:[%s7169_s7] sm:$0xff] }
 0x27d   : > { %4203 = vmatmul.mubr.f32.gmra.mrb[66].mxu0 %v4130_v49  ;;  %4280 = vmatmul.mubr.f32.gmra.mrb[66].mxu1 %v4130_v49  ;;  %v5437_v47 = vpack.c.bf16 %v4331_v41, %v4330_v40  ;;  %v5407_v48 = vpack.c.bf16 %v4317_v43, %v4316_v42  ;;  %v5439_v49 = vpack.c.bf16 %v4349_v45, %v4348_v44  ;;  %v4515_v19 = vld [vmem:[%s7167_s5 + $0x68] sm:$0xff]  ;;  %v4516_v12 = vld [vmem:[%s7167_s5 + $0x70] sm:$0xff]  ;;  %v4605_v28 = vld [vmem:[%s7169_s7 + $0x18] sm:$0xff] }
 0x27e   : > { %v5467_v21 = vpack.c.bf16 %v4515_v19, %v4514_v18  ;;  %v4603_v25 = vld [vmem:[%s7169_s7 + $0x8] sm:$0xff]  ;;  %v4606_v30 = vld [vmem:[%s7169_s7 + $0x20] sm:$0xff]  ;;  %v4608_v33 = vld [vmem:[%s7169_s7 + $0x30] sm:$0xff] }
 0x27f   : > { %5386 = vmatpush3.bf16.msra.mxu0 %v5385_v50  ;;  %5418 = vmatpush3.bf16.msra.mxu1 %v5417_v51  ;;  %v4300_v50 = vld [vmem:[%s7166_s4 + $0x70] sm:$0xff]  ;;  %v4301_v51 = vld [vmem:[%s7166_s4 + $0x78] sm:$0xff]  ;;  %v4607_v31 = vld [vmem:[%s7169_s7 + $0x28] sm:$0xff] }
 0x280   : > { %5388 = vmatprep.subr.bf16.mxu0 %v5387_v2  ;;  %5420 = vmatprep.subr.bf16.mxu1 %v5419_v54  ;;  %v5409_v53 = vpack.c.bf16 %v4301_v51, %v4300_v50  ;;  %v4333_v2 = vld [vmem:[%s7166_s4 + $0x178] sm:$0xff]  ;;  %v5483_v32 = vpack.c.bf16 %v4607_v31, %v4606_v30  ;;  %v4610_v36 = vld [vmem:[%s7169_s7 + $0x40] sm:$0xff]  ;;  %v4611_v37 = vld [vmem:[%s7169_s7 + $0x48] sm:$0xff] }
 0x281   : > { %v5441_v54 = vpack.c.bf16 %v4333_v2, %v4332_v52  ;;  %v4613_v40 = vld [vmem:[%s7169_s7 + $0x58] sm:$0xff]  ;;  %v4614_v42 = vld [vmem:[%s7169_s7 + $0x60] sm:$0xff]  ;;  %v4615_v43 = vld [vmem:[%s7169_s7 + $0x68] sm:$0xff] }
 0x282   : > { %v5499_v44 = vpack.c.bf16 %v4615_v43, %v4614_v42  ;;  %v4616_v61 = vld [vmem:[%s7169_s7 + $0x70] sm:$0xff]  ;;  %v4617_v62 = vld [vmem:[%s7169_s7 + $0x78] sm:$0xff] }
 0x283   : > { %5390 = vmatpush3.bf16.msra.mxu0 %v5389_v0  ;;  %5422 = vmatpush3.bf16.msra.mxu1 %v5421_v1 }
 0x284   : > { %5392 = vmatprep.subr.bf16.mxu0 %v5391_v5  ;;  %5424 = vmatprep.subr.bf16.mxu1 %v5423_v6  ;;  %v4506_v5 = vld [vmem:[%s7167_s5 + $0x20] sm:$0xff]  ;;  %v4507_v6 = vld [vmem:[%s7167_s5 + $0x28] sm:$0xff] }
 0x285   : > { %v5451_v11 = vpack.c.bf16 %v4507_v6, %v4506_v5 }
 0x287   : > { %5394 = vmatpush3.bf16.msra.mxu0 %v5393_v14  ;;  %5426 = vmatpush3.bf16.msra.mxu1 %v5425_v15  ;;  %v4509_v14 = vld [vmem:[%s7167_s5 + $0x38] sm:$0xff] }
 0x288   : > { %5396 = vmatprep.subr.bf16.mxu0 %v5395_v56  ;;  %5428 = vmatprep.subr.bf16.mxu1 %v5427_v17  ;;  %v5455_v15 = vpack.c.bf16 %v4509_v14, %v4508_v13  ;;  %v5459_v56 = vpack.c.bf16 %v4511_v16, %v4510_v55  ;;  %v4512_v17 = vld [vmem:[%s7167_s5 + $0x50] sm:$0xff] }
 0x289   : > { %v5463_v57 = vpack.c.bf16 %v4513_v20, %v4512_v17 }
 0x28b   : > { %5398 = vmatpush3.bf16.msra.mxu0 %v5397_v22  ;;  %5430 = vmatpush3.bf16.msra.mxu1 %v5429_v23  ;;  %v4517_v22 = vld [vmem:[%s7167_s5 + $0x78] sm:$0xff] }
 0x28c   : > { %5400 = vmatprep.subr.bf16.mxu0 %v5399_v26  ;;  %5432 = vmatprep.subr.bf16.mxu1 %v5431_v27  ;;  %v5471_v23 = vpack.c.bf16 %v4517_v22, %v4516_v12  ;;  %v4604_v26 = vld [vmem:[%s7169_s7 + $0x10] sm:$0xff]  ;;  %v5475_v27 = vpack.c.bf16 %v4603_v25, %v4602_v24 }
 0x28d   : > { %v5479_v29 = vpack.c.bf16 %v4605_v28, %v4604_v26 }
 0x28f   : > { %5402 = vmatpush3.bf16.msra.mxu0 %v5401_v34  ;;  %5434 = vmatpush3.bf16.msra.mxu1 %v5433_v35  ;;  %v4609_v34 = vld [vmem:[%s7169_s7 + $0x38] sm:$0xff] }
 0x290   : > { %5404 = vmatprep.subr.bf16.mxu0 %v5403_v38  ;;  %5436 = vmatprep.subr.bf16.mxu1 %v5435_v39  ;;  %v5487_v35 = vpack.c.bf16 %v4609_v34, %v4608_v33  ;;  %v5491_v38 = vpack.c.bf16 %v4611_v37, %v4610_v36  ;;  %v4612_v39 = vld [vmem:[%s7169_s7 + $0x50] sm:$0xff] }
 0x291   : > { %v5495_v41 = vpack.c.bf16 %v4613_v40, %v4612_v39 }
 0x293   : > { %5406 = vmatpush3.bf16.msra.mxu0 %v5405_v46  ;;  %5438 = vmatpush3.bf16.msra.mxu1 %v5437_v47 }
 0x294   : > { %5408 = vmatprep.subr.bf16.mxu0 %v5407_v48  ;;  %5440 = vmatprep.subr.bf16.mxu1 %v5439_v49 }
 0x297   : > { %5410 = vmatpush3.bf16.msra.mxu0 %v5409_v53  ;;  %5442 = vmatpush3.bf16.msra.mxu1 %v5441_v54 }
 0x298   : > { %5444 = vmatprep.subr.bf16.mxu0 %v5443_v60  ;;  %5476 = vmatprep.subr.bf16.mxu1 %v5475_v27 }
 0x34c   : > { %v4198_v63 = vpop.f32.mrb[64].mxu0  ;;  %v4275_v0 = vpop.f32.mrb[64].mxu1 }
 0x34d   : > { %v4200_v1 = vpop.f32.mrb[65].mxu0  ;;  %v4277_v3 = vpop.f32.mrb[65].mxu1 }
 0x34e   : > { %4414 = vmatprep.mubr.f32.mxu0 %v4200_v1  ;;  %4489 = vmatprep.mubr.f32.mxu1 %v4277_v3 }
 0x34f   : > { %4415 = vmatmul.mubr.f32.vlgmr.msra.gmra.mrb[68].mxu0 %v4198_v63  ;;  %4490 = vmatmul.mubr.f32.vlgmr.msra.gmra.mrb[68].mxu1 %v4275_v0  ;;  %v5503_v63 = vpack.c.bf16 %v4617_v62, %v4616_v61  ;;  %v5061_v0 = vld [vmem:[%s7168_s6] ss:$0 sm:$0xff] }
 0x350   : > { %v4204_v7 = vpop.f32.mrb[66].mxu0  ;;  %v4281_v8 = vpop.f32.mrb[66].mxu1  ;;  %5446 = vmatpush3.bf16.msra.mxu0 %v5443_v60  ;;  %5478 = vmatpush3.bf16.msra.mxu1 %v5475_v27 }
 0x351   : > { %v4206_v9 = vpop.f32.mrb[67].mxu0  ;;  %v4283_v10 = vpop.f32.mrb[67].mxu1  ;;  %5448 = vmatprep.subr.bf16.mxu0 %v5447_v4  ;;  %5480 = vmatprep.subr.bf16.mxu1 %v5479_v29 }
 0x352   : > { %4419 = vmatprep.mubr.f32.mxu0 %v4206_v9  ;;  %4494 = vmatprep.mubr.f32.mxu1 %v4283_v10 }
 0x353   : > { %4420 = vmatmul.mubr.f32.gmra.mrb[70].mxu0 %v4204_v7  ;;  %4495 = vmatmul.mubr.f32.gmra.mrb[70].mxu1 %v4281_v8 }
 0x354   : > { %5450 = vmatpush3.bf16.msra.mxu0 %v5447_v4  ;;  %5482 = vmatpush3.bf16.msra.mxu1 %v5479_v29 }
 0x355   : > { %5452 = vmatprep.subr.bf16.mxu0 %v5451_v11  ;;  %5484 = vmatprep.subr.bf16.mxu1 %v5483_v32 }
 0x358   : > { %5454 = vmatpush3.bf16.msra.mxu0 %v5451_v11  ;;  %5486 = vmatpush3.bf16.msra.mxu1 %v5483_v32 }
 0x359   : > { %5456 = vmatprep.subr.bf16.mxu0 %v5455_v15  ;;  %5488 = vmatprep.subr.bf16.mxu1 %v5487_v35 }
 0x35c   : > { %5458 = vmatpush3.bf16.msra.mxu0 %v5455_v15  ;;  %5490 = vmatpush3.bf16.msra.mxu1 %v5487_v35 }
 0x35d   : > { %5460 = vmatprep.subr.bf16.mxu0 %v5459_v56  ;;  %5492 = vmatprep.subr.bf16.mxu1 %v5491_v38 }
 0x360   : > { %5462 = vmatpush3.bf16.msra.mxu0 %v5459_v56  ;;  %5494 = vmatpush3.bf16.msra.mxu1 %v5491_v38 }
 0x361   : > { %5464 = vmatprep.subr.bf16.mxu0 %v5463_v57  ;;  %5496 = vmatprep.subr.bf16.mxu1 %v5495_v41 }
 0x364   : > { %5466 = vmatpush3.bf16.msra.mxu0 %v5463_v57  ;;  %5498 = vmatpush3.bf16.msra.mxu1 %v5495_v41 }
 0x365   : > { %5468 = vmatprep.subr.bf16.mxu0 %v5467_v21  ;;  %5500 = vmatprep.subr.bf16.mxu1 %v5499_v44 }
 0x368   : > { %5470 = vmatpush3.bf16.msra.mxu0 %v5467_v21  ;;  %5502 = vmatpush3.bf16.msra.mxu1 %v5499_v44 }
 0x369   : > { %5472 = vmatprep.subr.bf16.mxu0 %v5471_v23  ;;  %5504 = vmatprep.subr.bf16.mxu1 %v5503_v63 }
 0x36c   : > { %5474 = vmatpush3.bf16.msra.mxu0 %v5471_v23  ;;  %5506 = vmatpush3.bf16.msra.mxu1 %v5503_v63 }
 0x422   : > { %v5101_v45 = vpop.f32.mrb[68].mxu0  ;;  %v5139_v46 = vpop.f32.mrb[68].mxu1 }
 0x423   : > { %v5102_v47 = vpop.f32.mrb[69].mxu0  ;;  %v5140_v48 = vpop.f32.mrb[69].mxu1 }
 0x424   : > { %v5103_v49 = vadd.f32 %v5102_v47, %v5101_v45  ;;  %v5141_v50 = vadd.f32 %v5140_v48, %v5139_v46 }
 0x426   : > { %v4492_v51 = vadd.f32 %v5141_v50, %v5103_v49  ;;  %v5104_v52 = vpop.f32.mrb[70].mxu0  ;;  %v5142_v53 = vpop.f32.mrb[70].mxu1 }
 0x427   : > { %v5105_v2 = vpop.f32.mrb[71].mxu0  ;;  %v5143_v54 = vpop.f32.mrb[71].mxu1 }
 0x428   : > { %4500 = vst [vmem:[%s356_s22] sm:$0xff] %v4492_v51  ;;  %v5106_v58 = vadd.f32 %v5105_v2, %v5104_v52  ;;  %v5144_v59 = vadd.f32 %v5143_v54, %v5142_v53  ;;  %5213 = vmatprep.mubr.f32.mxu0 %v4492_v51 }
 0x42a   : > { %v4497_v60 = vadd.f32 %v5144_v59, %v5106_v58 }
 0x42c   : > { %4501 = vst [vmem:[%s356_s22 + $0x8] sm:$0xff] %v4497_v60  ;;  %5214 = vmatmul.mubr.f32.vlgmr.msra.gmra.mrb[72].mxu0 %v4497_v60  ;;  %s5959_s22 = smov [#allocation3]  }
 0x42d   : > { %s5898_s21 = sshll.u32 %s5959_s22, 4  ;;  %s5899_s21 = int_to_ptr.vmem [resolvable:$false] %s5898_s21 }
 0x42e   : > { %s5900_s28 = scalar_lea.vmem %s5899_s21, 512  ;;  %p5901_p0 = scmp.lt.s32.totalorder %s7104_s27, %s5899_s21 }
 0x42f   : > { %p5902_p1 = scmp.lt.s32.totalorder %s5900_s28, %s5894_s26 }
 0x431   : > { %p5903_p2 = por %p5902_p1, %p5901_p0 }
 0x433   : > { %p5904_p3 = pnand %p5903_p2, %p5897_p13 }
 0x4ff   : > { %v5215_v1 = vpop.f32.mrb[72].mxu0 }
 0x500   : > { %v4597_v3 = vadd.f32 %v5215_v1, %v5061_v0  ;;  %v4591_v4 = vpop.f32.mrb[73].mxu0 }
 0x501   : > { %v4592_v5 = vadd.f32 %v5061_v0, %v4591_v4 }
 0x502   : > { %v4601_v7 = vmax.f32 %v4597_v3, 0.0 }
 0x503   : > { %v4600_v6 = vmax.f32 %v4592_v5, 0.0 }
 0x505   : > { %5248 = vmatprep.mubr.f32.mxu1 %v4600_v6 }
 0x506   : > { %5249 = vmatmul.mubr.f32.vlgmr.msra.gmra.mrb[72].mxu1 %v4601_v7 }
 0x507   : > { %5907 = shalt.err (!%p5904_p3)
}
 0x508   : > { %s5908_s11 = scalar_lea.hbm %s7110_s20, 256  ;;  %s5912_s12 = scalar_lea.hbm %s7171_s9, 512 }
 0x509   : > { %p5909_p4 = scmp.ne.s32.totalorder %s7110_s20, %s5908_s11  ;;  %p5913_p9 = scmp.lt.u32.totalorder %s7110_s20, %s7171_s9 }
 0x50a   : > { %p5914_p10 = scmp.lt.u32.totalorder %s5912_s12, %s5908_s11  ;;  %p5916_p12 = scmp.lt.u32.totalorder %s5908_s11, %s7110_s20 }
 0x50b   : > { %p5910_p7 = pnand %p5909_p4, %p6055_p5 }
 0x50c   : > { %p5915_p11 = por %p5914_p10, %p5913_p9 }
 0x50d   : > { %p5911_p8 = pneg %p5910_p7 }
 0x50e   : > { %p5917_p13 = por %p5916_p12, %p5915_p11 }
 0x510   : > { %p5918_p0 = pnand %p5917_p13, %p5911_p8 }
 0x512   : > { %5921 = shalt.err (!%p5918_p0)
}
 0x513   : > { %s5960_s26 = smov 128   ;;  %s5961_s21 = smov 8   ;;  %v5062_v8 = vld [vmem:[%s7170_s8] ss:$0 sm:$0xff] }
 0x514   : > { %5764 = dma.vmem_to_hbm [thread:$0]  (%p6055_p5), %s7104_s27, 256, %s7110_s20, %s7114_s25, %s5960_s26, %s5960_s26, %s5961_s21  }
 0x515   : > { %s4819_s28 = sshll.u32 %s6038_s17, 1 }
 0x516   : > { %p373_p1 = scmp.lt.s32.totalorder %s4819_s28, 3 }
 0x518   : > { %s7188_s28 = smov (!%p373_p1, %s4819_s28), 3 }
 0x519   : > { %s4820_s29 = sshll.u32 %s7188_s28, 3 }
 0x51a   : > { %s376_s22 = scalar_lea.vmem %s7172_s10, %s4820_s29 }
 0x5d9   : > { %v5250_v9 = vpop.f32.mrb[72].mxu1 }
 0x5da   : > { %v4691_v10 = vpop.f32.mrb[73].mxu1  ;;  %v4697_v13 = vadd.f32 %v5250_v9, %v5062_v8 }
 0x5db   : > { %v4692_v11 = vadd.f32 %v5062_v8, %v4691_v10 }
 0x5dc   : > { %4701 = vst [vmem:[%s376_s22 + $0x8] sm:$0xff] %v4697_v13 }
 0x5dd   : > { %4700 = vst [vmem:[%s376_s22] sm:$0xff] %v4692_v11 }
 0x5de PF: > { %p5770_p5 = scmp.ge.s32.totalorder %s5956_s16, 2  ;;  %s4740_s17 = sand.u32 1, %s5944_s13  }
 0x5df   : > { %s4741_s23 = scalar_lea.sflag [#allocation4], %s4740_s17 }
 0x5e0   : > { %p5767_p2 = pnand %p5770_p5, %p6059_p6 }
 0x5e2   : > { %5939 = dma.done.wait (!%p5767_p2), %s4741_s23, 256  }
 0x5e3   : > { %5941 = vsyncadd (!%p5767_p2), %s4741_s23, 4294967040  ;;  %s7180_s27 = sld [smem:[#allocation6_spill]]  ;;  %p21_p3 = scmp.ge.s32.totalorder %s6042_s19, 4  }
 0x5e4   : > { %s7181_s13 = smov %s5948_s14  ;;  %s7182_s14 = smov %s5952_s15 }
 0x5e5   : > { %s7184_s16 = smov %s6042_s19  ;;  %23 = sbr.rel (!%p21_p3) target bundleno = 3 (0x3), region = 105 }
 0x5e9   : > { %s7183_s15 = smov %s7180_s27 }
 0x5ec   :  { %4754 = vsyncpa [#allocation4], 1 }
 0x5ed   :  { %4756 = vsyncpa [#allocation4 + $0x1], 1 }

</bundles_post_ra>
